<compile_context>
chip_gen: v5e
topology: v5e:2x2
jax: 0.10.0
libtpu: 0.0.40
codegen_flags: <defaults>
</compile_context>

<pallas_src>
import jax
import jax.numpy as jnp
from jax.experimental import pallas as pl
from jax.experimental.pallas import tpu as pltpu

DIMS = [320, 160, 160, 80, 20, 5, 1]            # output widths of the 7 Linear layers
NUM_LAYERS = len(DIMS)                          # 7
NUM_BN = NUM_LAYERS - 1                         # 6 BatchNorm1d layers
BN_EPS = 1e-5
OUT_PAD = 8                                     # lane padding of the scalar output layer
PAD_DIMS = [384, 256, 256, 128, 128, 128, OUT_PAD]   # zero-padded layer widths (x128 / 8)


def _round_up(x, m):
    return ((x + m - 1) // m) * m


def _cdiv(a, b):
    return -(-a // b)


def ann1_kernel(x_ref, *refs):
    """refs = [W0..W6 (bf16, (in_pad, out_pad), zero-padded),
               b0..b6 (f32, (1, out_pad), BN shift folded in),
               s0..s5 (f32, (1, out_pad), BN scale, applied post-matmul),
               out (f32, (tb, OUT_PAD))]"""
    w_refs = refs[0:NUM_LAYERS]
    b_refs = refs[NUM_LAYERS:2 * NUM_LAYERS]
    s_refs = refs[2 * NUM_LAYERS:2 * NUM_LAYERS + NUM_BN]
    out_ref = refs[-1]

    h = x_ref[...].astype(jnp.bfloat16)                      # cast to bf16 in-kernel
    for i in range(NUM_BN):
        z = jnp.dot(h, w_refs[i][...], preferred_element_type=jnp.float32)   # MXU
        z = z * s_refs[i][...] + b_refs[i][...]              # f32 BN scale + (bias+shift)
        z = jnp.maximum(z, 0.0)                              # ReLU (VPU)
        h = z.astype(jnp.bfloat16)
        # TODO(synk): training-mode dropout (RNG mask) and batch-statistic BN not modeled;
        # forward matches model.eval() semantics exactly.

    out_ref[...] = (jnp.dot(h, w_refs[-1][...], preferred_element_type=jnp.float32)
                    + b_refs[-1][...])


def init_params(key, input_size):
    """Deterministic PyTorch-style init for Linear and BatchNorm1d parameters."""
    dims = [input_size] + DIMS
    lin_keys = jax.random.split(key, 2 * NUM_LAYERS)
    weights, biases = [], []
    for i in range(NUM_LAYERS):
        fan_in = dims[i]
        bound = 1.0 / (fan_in ** 0.5)
        w = jax.random.uniform(lin_keys[2 * i], (dims[i + 1], dims[i]),
                               jnp.float32, -bound, bound)     # (out, in), PyTorch layout
        b = jax.random.uniform(lin_keys[2 * i + 1], (dims[i + 1],),
                               jnp.float32, -bound, bound)
        weights.append(w)
        biases.append(b)

    bn_keys = jax.random.split(jax.random.fold_in(key, 1), 4 * NUM_BN)
    gammas, betas, means, variances = [], [], [], []
    for i in range(NUM_BN):
        n = DIMS[i]
        gammas.append(1.0 + 0.1 * jax.random.normal(bn_keys[4 * i], (n,), jnp.float32))
        betas.append(0.1 * jax.random.normal(bn_keys[4 * i + 1], (n,), jnp.float32))
        means.append(0.1 * jax.random.normal(bn_keys[4 * i + 2], (n,), jnp.float32))
        variances.append(jnp.abs(1.0 + 0.1 * jax.random.normal(bn_keys[4 * i + 3], (n,),
                                                               jnp.float32)))
    return weights, biases, gammas, betas, means, variances


def prepare_params(params, input_size):
    """One-time prep: fold BN shift into bias, keep BN scale separate (f32, post-matmul),
    transpose to (in, out), zero-pad widths to PAD_DIMS, cast weights to bf16."""
    weights, biases, gammas, betas, means, variances = params
    in_dims = [input_size] + PAD_DIMS[:-1]
    w_args, b_args, s_args = [], [], []
    for i in range(NUM_LAYERS):
        w_t = jnp.asarray(weights[i], jnp.float32).T          # (in_raw, out_raw)
        b = jnp.asarray(biases[i], jnp.float32)
        in_raw, out_raw = w_t.shape
        in_pad, out_pad = in_dims[i], PAD_DIMS[i]
        w_t = jnp.pad(w_t, ((0, in_pad - in_raw), (0, out_pad - out_raw)))
        if i < NUM_BN:
            scale = gammas[i] / jnp.sqrt(variances[i] + BN_EPS)
            shift = betas[i] - means[i] * scale
            b = b * scale + shift                              # bias*scale + BN shift
            s_args.append(jnp.pad(scale, (0, out_pad - out_raw),
                                  constant_values=1.0).astype(jnp.float32)[None, :])
        b = jnp.pad(b, (0, out_pad - out_raw))
        w_args.append(w_t.astype(jnp.bfloat16))                # raw bf16 weights for MXU
        b_args.append(b.astype(jnp.float32)[None, :])
    return tuple(w_args), tuple(b_args), tuple(s_args), int(input_size)


def ann1_forward(x, prepped, *, block_batch=4096):
    w_args, b_args, s_args, in_dim = prepped
    batch = x.shape[0]
    assert x.shape[1] == in_dim

    # --- batch tile selection: big tiles, >=2 grid steps for large batches (v7x 2 TCs) ---
    steps = max(1, _cdiv(batch, block_batch))
    if steps == 1 and batch >= 2048:
        steps = 2
    tb = _cdiv(batch, steps)
    tb = _round_up(tb, 256 if tb >= 1024 else 16)              # never just 8 (bf16 packing)
    batch_p = tb * steps

    if batch_p != batch:                                       # pad only the ragged tail
        x = jnp.pad(x, ((0, batch_p - batch), (0, 0)))
    grid = (steps,)

    in_specs = [pl.BlockSpec((tb, in_dim), lambda i: (i, 0))]
    for a in (*w_args, *b_args, *s_args):
        in_specs.append(pl.BlockSpec(a.shape, lambda i: (0, 0)))    # VMEM-resident params
    out_spec = pl.BlockSpec((tb, OUT_PAD), lambda i: (i, 0))

    layer_in = [in_dim] + PAD_DIMS[:-1]
    flops = 2 * batch_p * sum(di * do for di, do in zip(layer_in, PAD_DIMS))
    bytes_accessed = (x.size * x.dtype.itemsize + batch_p * OUT_PAD * 4
                      + sum(w.size * 2 for w in w_args)
                      + sum(a.size * 4 for a in (*b_args, *s_args)))

    out = pl.pallas_call(
        ann1_kernel,
        out_shape=jax.ShapeDtypeStruct((batch_p, OUT_PAD), jnp.float32),
        grid=grid,
        in_specs=in_specs,
        out_specs=out_spec,
        compiler_params=pltpu.CompilerParams(
            dimension_semantics=("parallel",),
            vmem_limit_bytes=48 * 1024 * 1024),
        cost_estimate=pl.CostEstimate(flops=flops, transcendentals=0,
                                      bytes_accessed=bytes_accessed),
    )(x, *w_args, *b_args, *s_args)

    return out[:batch, :1]


def ann1_reference(x, params):
    """Pure-JAX f32 reference of the same eval-mode forward pass (PyTorch semantics)."""
    weights, biases, gammas, betas, means, variances = params
    h = x.astype(jnp.float32)
    for i in range(NUM_BN):
        h = h @ weights[i].T + biases[i]
        h = (h - means[i]) / jnp.sqrt(variances[i] + BN_EPS) * gammas[i] + betas[i]
        h = jnp.maximum(h, 0.0)
    return h @ weights[-1].T + biases[-1]


if __name__ == "__main__":
    key = jax.random.PRNGKey(0)
    k_x, k_p = jax.random.split(key)

    input_size = 32
    batch = 8
    x = jax.random.normal(k_x, (batch, input_size), jnp.float32)
    params = init_params(k_p, input_size)

    prepped = prepare_params(params, input_size)       # one-time, hoisted out of hot path
    out = ann1_forward(x, prepped)
    out = jax.block_until_ready(out)

    ref = ann1_reference(x, params)
    assert out.shape == (batch, 1)
    # bf16 matmuls with f32 accumulation / f32 BN scale: compare against f32 reference.
    assert jnp.allclose(out, ref, atol=5e-2, rtol=5e-2)

    print("KERNEL_OK")
</pallas_src>

<mosaic_0001>
module attributes {stable_mosaic.version = 11 : i64} {
  func.func @ann1_kernel(%arg0: i32, %arg1: memref<16x32xf32, #tpu.memory_space<vmem>>, %arg2: memref<32x384xbf16, #tpu.memory_space<vmem>>, %arg3: memref<384x256xbf16, #tpu.memory_space<vmem>>, %arg4: memref<256x256xbf16, #tpu.memory_space<vmem>>, %arg5: memref<256x128xbf16, #tpu.memory_space<vmem>>, %arg6: memref<128x128xbf16, #tpu.memory_space<vmem>>, %arg7: memref<128x128xbf16, #tpu.memory_space<vmem>>, %arg8: memref<128x8xbf16, #tpu.memory_space<vmem>>, %arg9: memref<1x384xf32, #tpu.memory_space<vmem>>, %arg10: memref<1x256xf32, #tpu.memory_space<vmem>>, %arg11: memref<1x256xf32, #tpu.memory_space<vmem>>, %arg12: memref<1x128xf32, #tpu.memory_space<vmem>>, %arg13: memref<1x128xf32, #tpu.memory_space<vmem>>, %arg14: memref<1x128xf32, #tpu.memory_space<vmem>>, %arg15: memref<1x8xf32, #tpu.memory_space<vmem>>, %arg16: memref<1x384xf32, #tpu.memory_space<vmem>>, %arg17: memref<1x256xf32, #tpu.memory_space<vmem>>, %arg18: memref<1x256xf32, #tpu.memory_space<vmem>>, %arg19: memref<1x128xf32, #tpu.memory_space<vmem>>, %arg20: memref<1x128xf32, #tpu.memory_space<vmem>>, %arg21: memref<1x128xf32, #tpu.memory_space<vmem>>, %arg22: memref<16x8xf32, #tpu.memory_space<vmem>>) attributes {dimension_semantics = [#tpu.dimension_semantics<parallel>], iteration_bounds = array<i64: 1>, scalar_prefetch = 0 : i64, scratch_operands = 0 : i64, tpu.core_type = #tpu.core_type<tc>, window_params = [{transform_indices = @transform_0, window_bounds = array<i64: 16, 32>}, {pipeline_mode = #tpu.pipeline_mode<synchronous>, transform_indices = @transform_1, window_bounds = array<i64: 32, 384>}, {pipeline_mode = #tpu.pipeline_mode<synchronous>, transform_indices = @transform_2, window_bounds = array<i64: 384, 256>}, {pipeline_mode = #tpu.pipeline_mode<synchronous>, transform_indices = @transform_3, window_bounds = array<i64: 256, 256>}, {pipeline_mode = #tpu.pipeline_mode<synchronous>, transform_indices = @transform_4, window_bounds = array<i64: 256, 128>}, {pipeline_mode = #tpu.pipeline_mode<synchronous>, transform_indices = @transform_5, window_bounds = array<i64: 128, 128>}, {pipeline_mode = #tpu.pipeline_mode<synchronous>, transform_indices = @transform_6, window_bounds = array<i64: 128, 128>}, {pipeline_mode = #tpu.pipeline_mode<synchronous>, transform_indices = @transform_7, window_bounds = array<i64: 128, 8>}, {pipeline_mode = #tpu.pipeline_mode<synchronous>, transform_indices = @transform_8, window_bounds = array<i64: 1, 384>}, {pipeline_mode = #tpu.pipeline_mode<synchronous>, transform_indices = @transform_9, window_bounds = array<i64: 1, 256>}, {pipeline_mode = #tpu.pipeline_mode<synchronous>, transform_indices = @transform_10, window_bounds = array<i64: 1, 256>}, {pipeline_mode = #tpu.pipeline_mode<synchronous>, transform_indices = @transform_11, window_bounds = array<i64: 1, 128>}, {pipeline_mode = #tpu.pipeline_mode<synchronous>, transform_indices = @transform_12, window_bounds = array<i64: 1, 128>}, {pipeline_mode = #tpu.pipeline_mode<synchronous>, transform_indices = @transform_13, window_bounds = array<i64: 1, 128>}, {pipeline_mode = #tpu.pipeline_mode<synchronous>, transform_indices = @transform_14, window_bounds = array<i64: 1, 8>}, {pipeline_mode = #tpu.pipeline_mode<synchronous>, transform_indices = @transform_15, window_bounds = array<i64: 1, 384>}, {pipeline_mode = #tpu.pipeline_mode<synchronous>, transform_indices = @transform_16, window_bounds = array<i64: 1, 256>}, {pipeline_mode = #tpu.pipeline_mode<synchronous>, transform_indices = @transform_17, window_bounds = array<i64: 1, 256>}, {pipeline_mode = #tpu.pipeline_mode<synchronous>, transform_indices = @transform_18, window_bounds = array<i64: 1, 128>}, {pipeline_mode = #tpu.pipeline_mode<synchronous>, transform_indices = @transform_19, window_bounds = array<i64: 1, 128>}, {pipeline_mode = #tpu.pipeline_mode<synchronous>, transform_indices = @transform_20, window_bounds = array<i64: 1, 128>}, {transform_indices = @transform_21, window_bounds = array<i64: 16, 8>}]} {
    %c0 = arith.constant 0 : index
    %c0_0 = arith.constant 0 : index
    %0 = vector.load %arg1[%c0, %c0_0] : memref<16x32xf32, #tpu.memory_space<vmem>>, vector<16x32xf32>
    %1 = arith.truncf %0 : vector<16x32xf32> to vector<16x32xbf16>
    %c0_1 = arith.constant 0 : index
    %c0_2 = arith.constant 0 : index
    %2 = vector.load %arg2[%c0_1, %c0_2] : memref<32x384xbf16, #tpu.memory_space<vmem>>, vector<32x384xbf16>
    %cst = arith.constant dense<0.000000e+00> : vector<16x384xf32>
    %3 = tpu.matmul %1, %2, %cst {dimension_numbers = #tpu.dot_dimension_numbers<[1], [0], [0], [1], [0, 0, 1, 1], [], []>} : vector<16x32xbf16>, vector<32x384xbf16>, vector<16x384xf32> -> vector<16x384xf32>
    %c0_3 = arith.constant 0 : index
    %c0_4 = arith.constant 0 : index
    %4 = vector.load %arg16[%c0_3, %c0_4] : memref<1x384xf32, #tpu.memory_space<vmem>>, vector<1x384xf32>
    %5 = vector.broadcast %4 : vector<1x384xf32> to vector<16x384xf32>
    %6 = arith.mulf %3, %5 : vector<16x384xf32>
    %c0_5 = arith.constant 0 : index
    %c0_6 = arith.constant 0 : index
    %7 = vector.load %arg9[%c0_5, %c0_6] : memref<1x384xf32, #tpu.memory_space<vmem>>, vector<1x384xf32>
    %8 = vector.broadcast %7 : vector<1x384xf32> to vector<16x384xf32>
    %9 = arith.addf %6, %8 : vector<16x384xf32>
    %cst_7 = arith.constant 0.000000e+00 : f32
    %10 = vector.broadcast %cst_7 : f32 to vector<16x384xf32>
    %11 = arith.maximumf %9, %10 : vector<16x384xf32>
    %12 = arith.truncf %11 : vector<16x384xf32> to vector<16x384xbf16>
    %c0_8 = arith.constant 0 : index
    %c0_9 = arith.constant 0 : index
    %13 = vector.load %arg3[%c0_8, %c0_9] : memref<384x256xbf16, #tpu.memory_space<vmem>>, vector<384x256xbf16>
    %cst_10 = arith.constant dense<0.000000e+00> : vector<16x256xf32>
    %14 = tpu.matmul %12, %13, %cst_10 {dimension_numbers = #tpu.dot_dimension_numbers<[1], [0], [0], [1], [0, 0, 1, 1], [], []>} : vector<16x384xbf16>, vector<384x256xbf16>, vector<16x256xf32> -> vector<16x256xf32>
    %c0_11 = arith.constant 0 : index
    %c0_12 = arith.constant 0 : index
    %15 = vector.load %arg17[%c0_11, %c0_12] : memref<1x256xf32, #tpu.memory_space<vmem>>, vector<1x256xf32>
    %16 = vector.broadcast %15 : vector<1x256xf32> to vector<16x256xf32>
    %17 = arith.mulf %14, %16 : vector<16x256xf32>
    %c0_13 = arith.constant 0 : index
    %c0_14 = arith.constant 0 : index
    %18 = vector.load %arg10[%c0_13, %c0_14] : memref<1x256xf32, #tpu.memory_space<vmem>>, vector<1x256xf32>
    %19 = vector.broadcast %18 : vector<1x256xf32> to vector<16x256xf32>
    %20 = arith.addf %17, %19 : vector<16x256xf32>
    %cst_15 = arith.constant 0.000000e+00 : f32
    %21 = vector.broadcast %cst_15 : f32 to vector<16x256xf32>
    %22 = arith.maximumf %20, %21 : vector<16x256xf32>
    %23 = arith.truncf %22 : vector<16x256xf32> to vector<16x256xbf16>
    %c0_16 = arith.constant 0 : index
    %c0_17 = arith.constant 0 : index
    %24 = vector.load %arg4[%c0_16, %c0_17] : memref<256x256xbf16, #tpu.memory_space<vmem>>, vector<256x256xbf16>
    %cst_18 = arith.constant dense<0.000000e+00> : vector<16x256xf32>
    %25 = tpu.matmul %23, %24, %cst_18 {dimension_numbers = #tpu.dot_dimension_numbers<[1], [0], [0], [1], [0, 0, 1, 1], [], []>} : vector<16x256xbf16>, vector<256x256xbf16>, vector<16x256xf32> -> vector<16x256xf32>
    %c0_19 = arith.constant 0 : index
    %c0_20 = arith.constant 0 : index
    %26 = vector.load %arg18[%c0_19, %c0_20] : memref<1x256xf32, #tpu.memory_space<vmem>>, vector<1x256xf32>
    %27 = vector.broadcast %26 : vector<1x256xf32> to vector<16x256xf32>
    %28 = arith.mulf %25, %27 : vector<16x256xf32>
    %c0_21 = arith.constant 0 : index
    %c0_22 = arith.constant 0 : index
    %29 = vector.load %arg11[%c0_21, %c0_22] : memref<1x256xf32, #tpu.memory_space<vmem>>, vector<1x256xf32>
    %30 = vector.broadcast %29 : vector<1x256xf32> to vector<16x256xf32>
    %31 = arith.addf %28, %30 : vector<16x256xf32>
    %cst_23 = arith.constant 0.000000e+00 : f32
    %32 = vector.broadcast %cst_23 : f32 to vector<16x256xf32>
    %33 = arith.maximumf %31, %32 : vector<16x256xf32>
    %34 = arith.truncf %33 : vector<16x256xf32> to vector<16x256xbf16>
    %c0_24 = arith.constant 0 : index
    %c0_25 = arith.constant 0 : index
    %35 = vector.load %arg5[%c0_24, %c0_25] : memref<256x128xbf16, #tpu.memory_space<vmem>>, vector<256x128xbf16>
    %cst_26 = arith.constant dense<0.000000e+00> : vector<16x128xf32>
    %36 = tpu.matmul %34, %35, %cst_26 {dimension_numbers = #tpu.dot_dimension_numbers<[1], [0], [0], [1], [0, 0, 1, 1], [], []>} : vector<16x256xbf16>, vector<256x128xbf16>, vector<16x128xf32> -> vector<16x128xf32>
    %c0_27 = arith.constant 0 : index
    %c0_28 = arith.constant 0 : index
    %37 = vector.load %arg19[%c0_27, %c0_28] : memref<1x128xf32, #tpu.memory_space<vmem>>, vector<1x128xf32>
    %38 = vector.broadcast %37 : vector<1x128xf32> to vector<16x128xf32>
    %39 = arith.mulf %36, %38 : vector<16x128xf32>
    %c0_29 = arith.constant 0 : index
    %c0_30 = arith.constant 0 : index
    %40 = vector.load %arg12[%c0_29, %c0_30] : memref<1x128xf32, #tpu.memory_space<vmem>>, vector<1x128xf32>
    %41 = vector.broadcast %40 : vector<1x128xf32> to vector<16x128xf32>
    %42 = arith.addf %39, %41 : vector<16x128xf32>
    %cst_31 = arith.constant 0.000000e+00 : f32
    %43 = vector.broadcast %cst_31 : f32 to vector<16x128xf32>
    %44 = arith.maximumf %42, %43 : vector<16x128xf32>
    %45 = arith.truncf %44 : vector<16x128xf32> to vector<16x128xbf16>
    %c0_32 = arith.constant 0 : index
    %c0_33 = arith.constant 0 : index
    %46 = vector.load %arg6[%c0_32, %c0_33] : memref<128x128xbf16, #tpu.memory_space<vmem>>, vector<128x128xbf16>
    %cst_34 = arith.constant dense<0.000000e+00> : vector<16x128xf32>
    %47 = tpu.matmul %45, %46, %cst_34 {dimension_numbers = #tpu.dot_dimension_numbers<[1], [0], [0], [1], [0, 0, 1, 1], [], []>} : vector<16x128xbf16>, vector<128x128xbf16>, vector<16x128xf32> -> vector<16x128xf32>
    %c0_35 = arith.constant 0 : index
    %c0_36 = arith.constant 0 : index
    %48 = vector.load %arg20[%c0_35, %c0_36] : memref<1x128xf32, #tpu.memory_space<vmem>>, vector<1x128xf32>
    %49 = vector.broadcast %48 : vector<1x128xf32> to vector<16x128xf32>
    %50 = arith.mulf %47, %49 : vector<16x128xf32>
    %c0_37 = arith.constant 0 : index
    %c0_38 = arith.constant 0 : index
    %51 = vector.load %arg13[%c0_37, %c0_38] : memref<1x128xf32, #tpu.memory_space<vmem>>, vector<1x128xf32>
    %52 = vector.broadcast %51 : vector<1x128xf32> to vector<16x128xf32>
    %53 = arith.addf %50, %52 : vector<16x128xf32>
    %cst_39 = arith.constant 0.000000e+00 : f32
    %54 = vector.broadcast %cst_39 : f32 to vector<16x128xf32>
    %55 = arith.maximumf %53, %54 : vector<16x128xf32>
    %56 = arith.truncf %55 : vector<16x128xf32> to vector<16x128xbf16>
    %c0_40 = arith.constant 0 : index
    %c0_41 = arith.constant 0 : index
    %57 = vector.load %arg7[%c0_40, %c0_41] : memref<128x128xbf16, #tpu.memory_space<vmem>>, vector<128x128xbf16>
    %cst_42 = arith.constant dense<0.000000e+00> : vector<16x128xf32>
    %58 = tpu.matmul %56, %57, %cst_42 {dimension_numbers = #tpu.dot_dimension_numbers<[1], [0], [0], [1], [0, 0, 1, 1], [], []>} : vector<16x128xbf16>, vector<128x128xbf16>, vector<16x128xf32> -> vector<16x128xf32>
    %c0_43 = arith.constant 0 : index
    %c0_44 = arith.constant 0 : index
    %59 = vector.load %arg21[%c0_43, %c0_44] : memref<1x128xf32, #tpu.memory_space<vmem>>, vector<1x128xf32>
    %60 = vector.broadcast %59 : vector<1x128xf32> to vector<16x128xf32>
    %61 = arith.mulf %58, %60 : vector<16x128xf32>
    %c0_45 = arith.constant 0 : index
    %c0_46 = arith.constant 0 : index
    %62 = vector.load %arg14[%c0_45, %c0_46] : memref<1x128xf32, #tpu.memory_space<vmem>>, vector<1x128xf32>
    %63 = vector.broadcast %62 : vector<1x128xf32> to vector<16x128xf32>
    %64 = arith.addf %61, %63 : vector<16x128xf32>
    %cst_47 = arith.constant 0.000000e+00 : f32
    %65 = vector.broadcast %cst_47 : f32 to vector<16x128xf32>
    %66 = arith.maximumf %64, %65 : vector<16x128xf32>
    %67 = arith.truncf %66 : vector<16x128xf32> to vector<16x128xbf16>
    %c0_48 = arith.constant 0 : index
    %c0_49 = arith.constant 0 : index
    %68 = vector.load %arg8[%c0_48, %c0_49] : memref<128x8xbf16, #tpu.memory_space<vmem>>, vector<128x8xbf16>
    %cst_50 = arith.constant dense<0.000000e+00> : vector<16x8xf32>
    %69 = tpu.matmul %67, %68, %cst_50 {dimension_numbers = #tpu.dot_dimension_numbers<[1], [0], [0], [1], [0, 0, 1, 1], [], []>} : vector<16x128xbf16>, vector<128x8xbf16>, vector<16x8xf32> -> vector<16x8xf32>
    %c0_51 = arith.constant 0 : index
    %c0_52 = arith.constant 0 : index
    %70 = vector.load %arg15[%c0_51, %c0_52] : memref<1x8xf32, #tpu.memory_space<vmem>>, vector<1x8xf32>
    %71 = vector.broadcast %70 : vector<1x8xf32> to vector<16x8xf32>
    %72 = arith.addf %69, %71 : vector<16x8xf32>
    %c0_53 = arith.constant 0 : index
    %c0_54 = arith.constant 0 : index
    %73 = vector.load %arg22[%c0_53, %c0_54] : memref<16x8xf32, #tpu.memory_space<vmem>>, vector<16x8xf32>
    tpu.vector_store %arg22[%c0_53, %c0_54], %72 {strides = array<i32>} : memref<16x8xf32, #tpu.memory_space<vmem>>, vector<16x8xf32>,
    return
  }
  func.func @transform_0(%arg0: i32) -> (i32, i32) {
    %c0_i32 = arith.constant 0 : i32
    %c0_i32_0 = arith.constant 0 : i32
    return %arg0, %c0_i32 : i32, i32
  }
  func.func @transform_1(%arg0: i32) -> (i32, i32) {
    %c0_i32 = arith.constant 0 : i32
    %c0_i32_0 = arith.constant 0 : i32
    %c0_i32_1 = arith.constant 0 : i32
    return %c0_i32, %c0_i32_0 : i32, i32
  }
  func.func @transform_2(%arg0: i32) -> (i32, i32) {
    %c0_i32 = arith.constant 0 : i32
    %c0_i32_0 = arith.constant 0 : i32
    %c0_i32_1 = arith.constant 0 : i32
    return %c0_i32, %c0_i32_0 : i32, i32
  }
  func.func @transform_3(%arg0: i32) -> (i32, i32) {
    %c0_i32 = arith.constant 0 : i32
    %c0_i32_0 = arith.constant 0 : i32
    %c0_i32_1 = arith.constant 0 : i32
    return %c0_i32, %c0_i32_0 : i32, i32
  }
  func.func @transform_4(%arg0: i32) -> (i32, i32) {
    %c0_i32 = arith.constant 0 : i32
    %c0_i32_0 = arith.constant 0 : i32
    %c0_i32_1 = arith.constant 0 : i32
    return %c0_i32, %c0_i32_0 : i32, i32
  }
  func.func @transform_5(%arg0: i32) -> (i32, i32) {
    %c0_i32 = arith.constant 0 : i32
    %c0_i32_0 = arith.constant 0 : i32
    %c0_i32_1 = arith.constant 0 : i32
    return %c0_i32, %c0_i32_0 : i32, i32
  }
  func.func @transform_6(%arg0: i32) -> (i32, i32) {
    %c0_i32 = arith.constant 0 : i32
    %c0_i32_0 = arith.constant 0 : i32
    %c0_i32_1 = arith.constant 0 : i32
    return %c0_i32, %c0_i32_0 : i32, i32
  }
  func.func @transform_7(%arg0: i32) -> (i32, i32) {
    %c0_i32 = arith.constant 0 : i32
    %c0_i32_0 = arith.constant 0 : i32
    %c0_i32_1 = arith.constant 0 : i32
    return %c0_i32, %c0_i32_0 : i32, i32
  }
  func.func @transform_8(%arg0: i32) -> (i32, i32) {
    %c0_i32 = arith.constant 0 : i32
    %c0_i32_0 = arith.constant 0 : i32
    %c0_i32_1 = arith.constant 0 : i32
    return %c0_i32, %c0_i32_0 : i32, i32
  }
  func.func @transform_9(%arg0: i32) -> (i32, i32) {
    %c0_i32 = arith.constant 0 : i32
    %c0_i32_0 = arith.constant 0 : i32
    %c0_i32_1 = arith.constant 0 : i32
    return %c0_i32, %c0_i32_0 : i32, i32
  }
  func.func @transform_10(%arg0: i32) -> (i32, i32) {
    %c0_i32 = arith.constant 0 : i32
    %c0_i32_0 = arith.constant 0 : i32
    %c0_i32_1 = arith.constant 0 : i32
    return %c0_i32, %c0_i32_0 : i32, i32
  }
  func.func @transform_11(%arg0: i32) -> (i32, i32) {
    %c0_i32 = arith.constant 0 : i32
    %c0_i32_0 = arith.constant 0 : i32
    %c0_i32_1 = arith.constant 0 : i32
    return %c0_i32, %c0_i32_0 : i32, i32
  }
  func.func @transform_12(%arg0: i32) -> (i32, i32) {
    %c0_i32 = arith.constant 0 : i32
    %c0_i32_0 = arith.constant 0 : i32
    %c0_i32_1 = arith.constant 0 : i32
    return %c0_i32, %c0_i32_0 : i32, i32
  }
  func.func @transform_13(%arg0: i32) -> (i32, i32) {
    %c0_i32 = arith.constant 0 : i32
    %c0_i32_0 = arith.constant 0 : i32
    %c0_i32_1 = arith.constant 0 : i32
    return %c0_i32, %c0_i32_0 : i32, i32
  }
  func.func @transform_14(%arg0: i32) -> (i32, i32) {
    %c0_i32 = arith.constant 0 : i32
    %c0_i32_0 = arith.constant 0 : i32
    %c0_i32_1 = arith.constant 0 : i32
    return %c0_i32, %c0_i32_0 : i32, i32
  }
  func.func @transform_15(%arg0: i32) -> (i32, i32) {
    %c0_i32 = arith.constant 0 : i32
    %c0_i32_0 = arith.constant 0 : i32
    %c0_i32_1 = arith.constant 0 : i32
    return %c0_i32, %c0_i32_0 : i32, i32
  }
  func.func @transform_16(%arg0: i32) -> (i32, i32) {
    %c0_i32 = arith.constant 0 : i32
    %c0_i32_0 = arith.constant 0 : i32
    %c0_i32_1 = arith.constant 0 : i32
    return %c0_i32, %c0_i32_0 : i32, i32
  }
  func.func @transform_17(%arg0: i32) -> (i32, i32) {
    %c0_i32 = arith.constant 0 : i32
    %c0_i32_0 = arith.constant 0 : i32
    %c0_i32_1 = arith.constant 0 : i32
    return %c0_i32, %c0_i32_0 : i32, i32
  }
  func.func @transform_18(%arg0: i32) -> (i32, i32) {
    %c0_i32 = arith.constant 0 : i32
    %c0_i32_0 = arith.constant 0 : i32
    %c0_i32_1 = arith.constant 0 : i32
    return %c0_i32, %c0_i32_0 : i32, i32
  }
  func.func @transform_19(%arg0: i32) -> (i32, i32) {
    %c0_i32 = arith.constant 0 : i32
    %c0_i32_0 = arith.constant 0 : i32
    %c0_i32_1 = arith.constant 0 : i32
    return %c0_i32, %c0_i32_0 : i32, i32
  }
  func.func @transform_20(%arg0: i32) -> (i32, i32) {
    %c0_i32 = arith.constant 0 : i32
    %c0_i32_0 = arith.constant 0 : i32
    %c0_i32_1 = arith.constant 0 : i32
    return %c0_i32, %c0_i32_0 : i32, i32
  }
  func.func @transform_21(%arg0: i32) -> (i32, i32) {
    %c0_i32 = arith.constant 0 : i32
    %c0_i32_0 = arith.constant 0 : i32
    return %arg0, %c0_i32 : i32, i32
  }
}

</mosaic_0001>

<bundles_post_ra>
// kernel: tpu_custom_call.1
= control target key start
LH: loop header
LB: loop body
LE: loop exit
PB: predicated region body
PF: predicated region fallthrough
CT: control target
= control target key end

     0   :  { %s2630_s0 = inlined_call_operand.hbm [shape: f32[16,32], index: 0, kind: input, shape index: {}]   ;;  %s2631_s1 = inlined_call_operand.hbm [shape: bf16[32,384], index: 1, kind: input, shape index: {}]   ;;  %s2632_s2 = inlined_call_operand.hbm [shape: bf16[384,256], index: 2, kind: input, shape index: {}]   ;;  %s2633_s3 = inlined_call_operand.hbm [shape: bf16[256,256], index: 3, kind: input, shape index: {}]   ;;  %s2634_s4 = inlined_call_operand.hbm [shape: bf16[256,128], index: 4, kind: input, shape index: {}]   ;;  %s2635_s5 = inlined_call_operand.vmem [shape: bf16[128,128], index: 5, kind: input, shape index: {}]   ;;  %s2636_s6 = inlined_call_operand.hbm [shape: bf16[128,128], index: 6, kind: input, shape index: {}]   ;;  %s2637_s7 = inlined_call_operand.vmem [shape: bf16[128,8], index: 7, kind: input, shape index: {}]   ;;  %s2638_s8 = inlined_call_operand.vmem [shape: f32[1,384], index: 8, kind: input, shape index: {}]   ;;  %s2639_s9 = inlined_call_operand.vmem [shape: f32[1,256], index: 9, kind: input, shape index: {}]   ;;  %s2640_s10 = inlined_call_operand.hbm [shape: f32[1,256], index: 10, kind: input, shape index: {}]   ;;  %s2641_s11 = inlined_call_operand.hbm [shape: f32[1,128], index: 11, kind: input, shape index: {}]   ;;  %s2642_s12 = inlined_call_operand.hbm [shape: f32[1,128], index: 12, kind: input, shape index: {}]   ;;  %s2643_s13 = inlined_call_operand.hbm [shape: f32[1,128], index: 13, kind: input, shape index: {}]   ;;  %s2644_s14 = inlined_call_operand.vmem [shape: f32[1,8], index: 14, kind: input, shape index: {}]   ;;  %s2645_s15 = inlined_call_operand.vmem [shape: f32[1,384], index: 15, kind: input, shape index: {}]   ;;  %s2646_s16 = inlined_call_operand.vmem [shape: f32[1,256], index: 16, kind: input, shape index: {}]   ;;  %s2647_s17 = inlined_call_operand.vmem [shape: f32[1,256], index: 17, kind: input, shape index: {}]   ;;  %s2648_s18 = inlined_call_operand.vmem [shape: f32[1,128], index: 18, kind: input, shape index: {}]   ;;  %s2649_s19 = inlined_call_operand.vmem [shape: f32[1,128], index: 19, kind: input, shape index: {}]   ;;  %s2650_s20 = inlined_call_operand.vmem [shape: f32[1,128], index: 20, kind: input, shape index: {}]   ;;  %s2651_s21 = inlined_call_operand.vmem [shape: f32[16,8], index: 21, kind: output, shape index: {}]  }
   0x1   :  { %2657 = sst [smem:[#allocation24_spill]] %s2630_s0 }
   0x2   :  { %2658 = sst [smem:[#allocation25_spill]] %s2631_s1 }
   0x3   :  { %2659 = sst [smem:[#allocation26_spill]] %s2632_s2 }
   0x4   :  { %2660 = sst [smem:[#allocation27_spill]] %s2633_s3 }
   0x5   :  { %2661 = sst [smem:[#allocation28_spill]] %s2634_s4 }
   0x6   :  { %2662 = sst [smem:[#allocation29_spill]] %s2635_s5 }
   0x7   :  { %2663 = sst [smem:[#allocation30_spill]] %s2651_s21 }
   0x8   :  { %26 = vsyncpa [#allocation3], 0 }
   0x9   :  { %27 = vsyncpa [#allocation5], 0 }
   0xa   :  { %28 = vsyncpa [#allocation8], 0 }
   0xb   :  { %29 = vsyncpa [#allocation11], 0 }
   0xc   :  { %30 = vsyncpa [#allocation14], 0  ;;  %s2664_s26 = sld [smem:[#allocation25_spill]] }
  0x12   :  { %s49_s27 = sshll.u32 %s2664_s26, 4  ;;  %s50_s27 = int_to_ptr.hbm [resolvable:$true] %s49_s27 }
  0x13   :  { %31 = vsyncpa [#allocation17], 0  ;;  %s2375_s3 = smov [#allocation4]   ;;  %s2376_s29 = smov 192  }
  0x14   :  { %s51_s28 = sshll.u32 %s2375_s3, 4  ;;  %s2377_s0 = smov 12   ;;  %s52_s28 = int_to_ptr.vmem [resolvable:$true] %s51_s28 }
  0x15   :  { %57 = dma.hbm_to_vmem [thread:$0]  %s50_s27, 768, %s52_s28, [#allocation5], %s2376_s29, %s2376_s29, %s2377_s0  }
  0x16   :  { %s2665_s5 = sld [smem:[#allocation27_spill]]  ;;  %s2378_s23 = smov [#allocation7]  }
  0x17   :  { %s77_s1 = sshll.u32 %s2378_s23, 4  ;;  %s2654_s24 = smov 128   ;;  %s78_s1 = int_to_ptr.vmem [resolvable:$true] %s77_s1 }
  0x18   :  { %s2380_s21 = smov 8   ;;  %s103_s26 = sshll.u32 %s2636_s6, 4  ;;  %s104_s26 = int_to_ptr.hbm [resolvable:$true] %s103_s26 }
  0x19   :  { %s2381_s27 = smov [#allocation10]   ;;  %s134_s0 = sshll.u32 %s2641_s11, 4  ;;  %s135_s0 = int_to_ptr.hbm [resolvable:$true] %s134_s0 }
  0x1a   :  { %s105_s3 = sshll.u32 %s2381_s27, 4  ;;  %s2656_s4 = smov 64   ;;  %s106_s3 = int_to_ptr.vmem [resolvable:$true] %s105_s3 }
  0x1b   :  { %s2383_s30 = smov 4   ;;  %s2666_s6 = sld [smem:[#allocation24_spill]] }
  0x1c   :  { %s75_s22 = sshll.u32 %s2665_s5, 4  ;;  %s2384_s5 = smov [#allocation13]   ;;  %s76_s22 = int_to_ptr.hbm [resolvable:$true] %s75_s22 }
  0x1d   :  { %83 = dma.hbm_to_vmem [thread:$0]  %s76_s22, 4096, %s78_s1, [#allocation8], %s2654_s24, %s2654_s24, %s2380_s21  }
  0x1e   :  { %111 = dma.hbm_to_vmem [thread:$0]  %s104_s26, 1024, %s106_s3, [#allocation11], %s2656_s4, %s2656_s4, %s2383_s30  }
  0x1f   :  { %s136_s22 = sshll.u32 %s2384_s5, 4  ;;  %s2667_s28 = sld [smem:[#allocation26_spill]]  ;;  %s137_s22 = int_to_ptr.vmem [resolvable:$true] %s136_s22 }
  0x20   :  { %139 = dma.hbm_to_vmem [thread:$0]  %s135_s0, 16, %s137_s22, [#allocation14]  }
  0x21   :  { %s36_s2 = sshll.u32 %s2666_s6, 4  ;;  %s2385_s29 = smov [#allocation2]   ;;  %s37_s2 = int_to_ptr.hbm [resolvable:$true] %s36_s2 }
  0x22   :  { %s38_s24 = sshll.u32 %s2385_s29, 4  ;;  %s2668_s26 = smov 128   ;;  %s39_s24 = int_to_ptr.vmem [resolvable:$true] %s38_s24 }
  0x23   :  { %44 = dma.hbm_to_vmem [thread:$0]  %s37_s2, 256, %s39_s24, [#allocation3], %s2668_s26, %s2668_s26, %s2380_s21  }
  0x24   :  { %s2386_s3 = smov [#allocation6]   ;;  %s2669_s1 = sld [smem:[#allocation28_spill]] }
  0x25   :  { %s62_s11 = sshll.u32 %s2667_s28, 4  ;;  %s64_s5 = sshll.u32 %s2386_s3, 4  ;;  %s63_s11 = int_to_ptr.hbm [resolvable:$true] %s62_s11  ;;  %s65_s5 = int_to_ptr.vmem [resolvable:$true] %s64_s5 }
  0x26   :  { %70 = dma.hbm_to_vmem [thread:$0]  %s63_s11, 6144, %s65_s5, [#allocation5], %s2668_s26, %s2668_s26, %s2380_s21  }
  0x27   :  { %s123_s25 = sshll.u32 %s2640_s10, 4  ;;  %s2387_s27 = smov [#allocation9]   ;;  %s124_s25 = int_to_ptr.hbm [resolvable:$true] %s123_s25 }
  0x28   :  { %s90_s28 = sshll.u32 %s2387_s27, 4  ;;  %s2670_s24 = smov 64   ;;  %s91_s28 = int_to_ptr.vmem [resolvable:$true] %s90_s28 }
  0x29   :  { %s2388_s4 = smov [#allocation12]   ;;  %s145_s23 = sshll.u32 %s2642_s12, 4  ;;  %s146_s23 = int_to_ptr.hbm [resolvable:$true] %s145_s23 }
  0x2a   :  { %s88_s6 = sshll.u32 %s2669_s1, 4  ;;  %s125_s2 = sshll.u32 %s2388_s4, 4  ;;  %s89_s6 = int_to_ptr.hbm [resolvable:$true] %s88_s6  ;;  %s126_s2 = int_to_ptr.vmem [resolvable:$true] %s125_s2 }
  0x2b   :  { %96 = dma.hbm_to_vmem [thread:$0]  %s89_s6, 2048, %s91_s28, [#allocation8], %s2670_s24, %s2670_s24, %s2383_s30  }
  0x2c   :  { %128 = dma.hbm_to_vmem [thread:$0]  %s124_s25, 32, %s126_s2, [#allocation11]  }
  0x2d   :  { %s156_s10 = sshll.u32 %s2643_s13, 4  ;;  %s2389_s26 = smov [#allocation15]   ;;  %s157_s10 = int_to_ptr.hbm [resolvable:$true] %s156_s10 }
  0x2e   :  { %s147_s5 = sshll.u32 %s2389_s26, 4  ;;  %s2390_s1 = smov [#allocation16]   ;;  %s148_s5 = int_to_ptr.vmem [resolvable:$true] %s147_s5 }
  0x2f   :  { %150 = dma.hbm_to_vmem [thread:$0]  %s146_s23, 16, %s148_s5, [#allocation14]  }
  0x30   :  { %s158_s30 = sshll.u32 %s2390_s1, 4  ;;  %s159_s30 = int_to_ptr.vmem [resolvable:$true] %s158_s30 }
  0x31   :  { %161 = dma.hbm_to_vmem [thread:$0]  %s157_s10, 16, %s159_s30, [#allocation17]  }
  0x32   :  { %2363 = dma.done.wait [#allocation3], 256  }
  0x33   :  { %2364 = vsyncadd [#allocation3], 4294967040 }
  0x34   :  { %2365 = dma.done.wait [#allocation5], 6912  }
  0x35   :  { %2366 = vsyncadd [#allocation5], 4294960384 }
  0x36   :  { %2367 = dma.done.wait [#allocation8], 6144  }
  0x37   :  { %2368 = vsyncadd [#allocation8], 4294961152 }
  0x38   :  { %2369 = dma.done.wait [#allocation11], 1056  }
  0x39   :  { %2370 = vsyncadd [#allocation11], 4294966240 }
  0x3a   :  { %2371 = dma.done.wait [#allocation14], 32  }
  0x3b   :  { %2372 = vsyncadd [#allocation14], 4294967264 }
  0x3c   :  { %2373 = dma.done.wait [#allocation17], 16  }
  0x3d   :  { %2374 = vsyncadd [#allocation17], 4294967280  ;;  %v1481_v0 = vld [vmem:[#allocation4 + $0x18] sm:$0xf]  ;;  %v1978_v1 = vld [vmem:[#allocation4 + $0x20] sm:$0xf0] }
  0x3e   :  { %v1977_v2 = vld [vmem:[#allocation4 + $0x1c] sm:$0xf]  ;;  %v1482_v3 = vor.u32 %v1978_v1, %v1481_v0  ;;  %v1483_v4 = vld [vmem:[#allocation4 + $0x24] sm:$0xf0]  ;;  %v1469_v5 = vld [vmem:[#allocation4] sm:$0xf] }
  0x3f   :  { %v1975_v6 = vld [vmem:[#allocation4 + $0x8] sm:$0xf0]  ;;  %v1486_v7 = vor.u32 %v1977_v2, %v1483_v4  ;;  %v1974_v8 = vld [vmem:[#allocation4 + $0x4] sm:$0xf]  ;;  %v1471_v9 = vld [vmem:[#allocation4 + $0xc] sm:$0xf0] }
  0x40   :  { %v217_v10 = vld [vmem:[#allocation2] sm:$0xff]  ;;  %270 = vmatpush.bf16.msra.mxu2 %v1482_v3  ;;  %v1470_v11 = vor.u32 %v1975_v6, %v1469_v5  ;;  %v218_v12 = vld [vmem:[#allocation2 + $0x8] sm:$0xff]  ;;  %v1489_v13 = vld [vmem:[#allocation4 + $0x20] sm:$0xf]  ;;  %v1474_v15 = vor.u32 %v1974_v8, %v1471_v9  ;;  %vm260_vm0 = vcmask 261120   ;;  %s2671_s27 = sld [smem:[#allocation29_spill]] }
  0x41   :  { %v1979_v14 = vld [vmem:[#allocation4 + $0x28] sm:$0xf0]  ;;  %284 = vmatpush.bf16.msra.mxu1 %v1486_v7  ;;  %v1477_v17 = vld [vmem:[#allocation4 + $0x8] sm:$0xf]  ;;  %v1976_v18 = vld [vmem:[#allocation4 + $0x10] sm:$0xf0]  ;;  %v219_v23 = vpack.c.bf16 %v218_v12, %v217_v10 }
  0x42   :  { %v1490_v16 = vor.u32 %v1979_v14, %v1489_v13  ;;  %v1552_v19 = vld [vmem:[#allocation6 + $0x70] sm:$0xf]  ;;  %v1995_v20 = vld [vmem:[#allocation6 + $0x74] sm:$0xf0]  ;;  %v1544_v26 = vld [vmem:[#allocation6 + $0x60] sm:$0xf]  ;;  %v1478_v30 = vor.u32 %v1976_v18, %v1477_v17 }
  0x43   :  { %v1616_v21 = vld [vmem:[#allocation6 + $0xf0] sm:$0xf]  ;;  %v2011_v22 = vld [vmem:[#allocation6 + $0xf4] sm:$0xf0]  ;;  %v1553_v24 = vor.u32 %v1995_v20, %v1552_v19  ;;  %v1993_v27 = vld [vmem:[#allocation6 + $0x64] sm:$0xf0] }
  0x44   :  { %v1617_v25 = vor.u32 %v2011_v22, %v1616_v21  ;;  %v1608_v28 = vld [vmem:[#allocation6 + $0xe0] sm:$0xf]  ;;  %271 = vmatpush.bf16.msra.mxu2 %v1470_v11  ;;  %v2009_v29 = vld [vmem:[#allocation6 + $0xe4] sm:$0xf0]  ;;  %v1545_v31 = vor.u32 %v1993_v27, %v1544_v26  ;;  %v1536_v33 = vld [vmem:[#allocation6 + $0x50] sm:$0xf] }
  0x45   :  { %285 = vmatpush.bf16.msra.mxu1 %v1474_v15  ;;  %631 = vmatpush.bf16.msra.mxu3 %v1553_v24  ;;  %v1609_v32 = vor.u32 %v2009_v29, %v1608_v28  ;;  %v1991_v34 = vld [vmem:[#allocation6 + $0x54] sm:$0xf0]  ;;  %v1600_v35 = vld [vmem:[#allocation6 + $0xd0] sm:$0xf]  ;;  %v1994_v37 = vld [vmem:[#allocation6 + $0x74] sm:$0xf] }
  0x46   :  { %645 = vmatpush.bf16.msra.mxu0 %v1617_v25  ;;  %v2007_v36 = vld [vmem:[#allocation6 + $0xd4] sm:$0xf0]  ;;  %v1554_v38 = vld [vmem:[#allocation6 + $0x78] sm:$0xf0]  ;;  %v1528_v40 = vld [vmem:[#allocation6 + $0x40] sm:$0xf]  ;;  %v1537_v43 = vor.u32 %v1991_v34, %v1536_v33 }
  0x47   :  { %1491 = vmatmul.msk.bf16.vlgmr.msra.gmra.mxu2 %vm260_vm0, %v219_v23  ;;  %v1557_v39 = vor.u32 %v1994_v37, %v1554_v38  ;;  %v1992_v41 = vld [vmem:[#allocation6 + $0x64] sm:$0xf]  ;;  %v1546_v42 = vld [vmem:[#allocation6 + $0x68] sm:$0xf0]  ;;  %v1601_v44 = vor.u32 %v2007_v36, %v1600_v35  ;;  %v1989_v45 = vld [vmem:[#allocation6 + $0x44] sm:$0xf0] }
  0x48   :  { %298 = vmatpush.bf16.msrb.mxu2 %v1490_v16  ;;  %1492 = vmatmul.msk.bf16.vlgmr.msra.gmra.mxu1 %vm260_vm0, %v219_v23  ;;  %v1592_v46 = vld [vmem:[#allocation6 + $0xc0] sm:$0xf]  ;;  %v2005_v47 = vld [vmem:[#allocation6 + $0xc4] sm:$0xf0]  ;;  %v1549_v48 = vor.u32 %v1992_v41, %v1546_v42  ;;  %v1529_v49 = vor.u32 %v1989_v45, %v1528_v40  ;;  %v1520_v51 = vld [vmem:[#allocation6 + $0x30] sm:$0xf] }
  0x49   :  { %632 = vmatpush.bf16.msra.mxu3 %v1545_v31  ;;  %v1593_v50 = vor.u32 %v2005_v47, %v1592_v46  ;;  %v1987_v52 = vld [vmem:[#allocation6 + $0x34] sm:$0xf0]  ;;  %v1584_v53 = vld [vmem:[#allocation6 + $0xb0] sm:$0xf]  ;;  %v1512_v57 = vld [vmem:[#allocation6 + $0x20] sm:$0xf] }
  0x4a   :  { %646 = vmatpush.bf16.msra.mxu0 %v1609_v32  ;;  %v2003_v54 = vld [vmem:[#allocation6 + $0xb4] sm:$0xf0]  ;;  %v1521_v55 = vor.u32 %v1987_v52, %v1520_v51  ;;  %v1985_v58 = vld [vmem:[#allocation6 + $0x24] sm:$0xf0]  ;;  %v1576_v59 = vld [vmem:[#allocation6 + $0xa0] sm:$0xf] }
  0x4b   :  { %v1585_v56 = vor.u32 %v2003_v54, %v1584_v53  ;;  %v2001_v60 = vld [vmem:[#allocation6 + $0xa4] sm:$0xf0]  ;;  %v1513_v61 = vor.u32 %v1985_v58, %v1512_v57  ;;  %v1990_v63 = vld [vmem:[#allocation6 + $0x54] sm:$0xf]  ;;  %v1538_v0 = vld [vmem:[#allocation6 + $0x58] sm:$0xf0] }
  0x4c   :  { %299 = vmatpush.bf16.msrb.mxu2 %v1478_v30  ;;  %v1577_v62 = vor.u32 %v2001_v60, %v1576_v59  ;;  %v1541_v1 = vor.u32 %v1990_v63, %v1538_v0  ;;  %v1504_v2 = vld [vmem:[#allocation6 + $0x10] sm:$0xf]  ;;  %v1983_v3 = vld [vmem:[#allocation6 + $0x14] sm:$0xf0]  ;;  %v1988_v7 = vld [vmem:[#allocation6 + $0x44] sm:$0xf] }
  0x4d   :  { %633 = vmatpush.bf16.msra.mxu3 %v1537_v43  ;;  %v1505_v4 = vor.u32 %v1983_v3, %v1504_v2  ;;  %v1568_v5 = vld [vmem:[#allocation6 + $0x90] sm:$0xf]  ;;  %v1999_v6 = vld [vmem:[#allocation6 + $0x94] sm:$0xf0]  ;;  %v1530_v9 = vld [vmem:[#allocation6 + $0x48] sm:$0xf0] }
  0x4e   :  { %647 = vmatpush.bf16.msra.mxu0 %v1601_v44  ;;  %v1569_v8 = vor.u32 %v1999_v6, %v1568_v5  ;;  %v1533_v10 = vor.u32 %v1988_v7, %v1530_v9  ;;  %v1496_v11 = vld [vmem:[#allocation6] sm:$0xf]  ;;  %v1981_v12 = vld [vmem:[#allocation6 + $0x4] sm:$0xf0]  ;;  %v1680_v16 = vld [vmem:[#allocation6 + $0x170] sm:$0xf] }
  0x4f   :  { %v1560_v13 = vld [vmem:[#allocation6 + $0x80] sm:$0xf]  ;;  %v1497_v14 = vor.u32 %v1981_v12, %v1496_v11  ;;  %v1997_v15 = vld [vmem:[#allocation6 + $0x84] sm:$0xf0]  ;;  %v2027_v18 = vld [vmem:[#allocation6 + $0x174] sm:$0xf0] }
  0x50   :  { %673 = vmatpush.bf16.msra.mxu2 %v1557_v39  ;;  %v1561_v17 = vor.u32 %v1997_v15, %v1560_v13  ;;  %v1986_v19 = vld [vmem:[#allocation6 + $0x34] sm:$0xf]  ;;  %v1681_v20 = vor.u32 %v2027_v18, %v1680_v16  ;;  %v1522_v21 = vld [vmem:[#allocation6 + $0x38] sm:$0xf0]  ;;  %v1672_v29 = vld [vmem:[#allocation6 + $0x160] sm:$0xf] }
  0x51   :  { %634 = vmatpush.bf16.msra.mxu3 %v1529_v49  ;;  %v2010_v22 = vld [vmem:[#allocation6 + $0xf4] sm:$0xf]  ;;  %v1525_v24 = vor.u32 %v1986_v19, %v1522_v21  ;;  %v1682_v27 = vld [vmem:[#allocation6 + $0x178] sm:$0xf0]  ;;  %v2025_v30 = vld [vmem:[#allocation6 + $0x164] sm:$0xf0] }
  0x52   :  { %648 = vmatpush.bf16.msra.mxu0 %v1593_v50  ;;  %v2026_v26 = vld [vmem:[#allocation6 + $0x174] sm:$0xf]  ;;  %659 = vmatpush.bf16.msrb.mxu1 %v1681_v20  ;;  %v1984_v31 = vld [vmem:[#allocation6 + $0x24] sm:$0xf]  ;;  %v1673_v32 = vor.u32 %v2025_v30, %v1672_v29  ;;  %v1514_v33 = vld [vmem:[#allocation6 + $0x28] sm:$0xf0] }
  0x53   :  { %v1685_v28 = vor.u32 %v2026_v26, %v1682_v27  ;;  %v2008_v34 = vld [vmem:[#allocation6 + $0xe4] sm:$0xf]  ;;  %v1610_v35 = vld [vmem:[#allocation6 + $0xe8] sm:$0xf0]  ;;  %v1517_v36 = vor.u32 %v1984_v31, %v1514_v33  ;;  %v1664_v41 = vld [vmem:[#allocation6 + $0x150] sm:$0xf] }
  0x54   :  { %674 = vmatpush.bf16.msra.mxu2 %v1549_v48  ;;  %v1613_v37 = vor.u32 %v2008_v34, %v1610_v35  ;;  %v2024_v38 = vld [vmem:[#allocation6 + $0x164] sm:$0xf]  ;;  %v1674_v39 = vld [vmem:[#allocation6 + $0x168] sm:$0xf0]  ;;  %v2023_v42 = vld [vmem:[#allocation6 + $0x154] sm:$0xf0] }
  0x55   :  { %635 = vmatpush.bf16.msra.mxu3 %v1521_v55  ;;  %v1677_v40 = vor.u32 %v2024_v38, %v1674_v39  ;;  %v1982_v43 = vld [vmem:[#allocation6 + $0x14] sm:$0xf]  ;;  %v1665_v44 = vor.u32 %v2023_v42, %v1664_v41  ;;  %v1506_v45 = vld [vmem:[#allocation6 + $0x18] sm:$0xf0]  ;;  %v1656_v53 = vld [vmem:[#allocation6 + $0x140] sm:$0xf] }
  0x56   :  { %649 = vmatpush.bf16.msra.mxu0 %v1585_v56  ;;  %660 = vmatpush.bf16.msrb.mxu1 %v1673_v32  ;;  %v2006_v46 = vld [vmem:[#allocation6 + $0xd4] sm:$0xf]  ;;  %v1602_v47 = vld [vmem:[#allocation6 + $0xd8] sm:$0xf0]  ;;  %v1509_v48 = vor.u32 %v1982_v43, %v1506_v45  ;;  %v2021_v54 = vld [vmem:[#allocation6 + $0x144] sm:$0xf0] }
  0x57   :  { %1493 = vmatmul.msk.bf16.vlgmr.msrb.gmra.mxu2 %vm260_vm0, %v219_v23  ;;  %v1618_v23 = vld [vmem:[#allocation6 + $0xf8] sm:$0xf0]  ;;  %v1605_v49 = vor.u32 %v2006_v46, %v1602_v47  ;;  %v2022_v50 = vld [vmem:[#allocation6 + $0x154] sm:$0xf]  ;;  %v1980_v55 = vld [vmem:[#allocation6 + $0x4] sm:$0xf]  ;;  %v1657_v56 = vor.u32 %v2021_v54, %v1656_v53 }
  0x58   :  { %675 = vmatpush.bf16.msra.mxu2 %v1541_v1  ;;  %v1621_v25 = vor.u32 %v2010_v22, %v1618_v23  ;;  %v1666_v51 = vld [vmem:[#allocation6 + $0x158] sm:$0xf0]  ;;  %v1498_v57 = vld [vmem:[#allocation6 + $0x8] sm:$0xf0]  ;;  %v2004_v58 = vld [vmem:[#allocation6 + $0xc4] sm:$0xf] }
  0x59   :  { %636 = vmatpush.bf16.msra.mxu3 %v1513_v61  ;;  %v1669_v52 = vor.u32 %v2022_v50, %v1666_v51  ;;  %v1594_v59 = vld [vmem:[#allocation6 + $0xc8] sm:$0xf0]  ;;  %v1501_v60 = vor.u32 %v1980_v55, %v1498_v57  ;;  %v1648_v1 = vld [vmem:[#allocation6 + $0x130] sm:$0xf]  ;;  %v2019_v2 = vld [vmem:[#allocation6 + $0x134] sm:$0xf0] }
  0x5a   :  { %650 = vmatpush.bf16.msra.mxu0 %v1577_v62  ;;  %661 = vmatpush.bf16.msrb.mxu1 %v1665_v44  ;;  %v1597_v61 = vor.u32 %v2004_v58, %v1594_v59  ;;  %v2020_v62 = vld [vmem:[#allocation6 + $0x144] sm:$0xf]  ;;  %v1658_v63 = vld [vmem:[#allocation6 + $0x148] sm:$0xf0]  ;;  %v1649_v3 = vor.u32 %v2019_v2, %v1648_v1  ;;  %v1586_v5 = vld [vmem:[#allocation6 + $0xb8] sm:$0xf0] }
  0x5b   :  { %v1661_v0 = vor.u32 %v2020_v62, %v1658_v63  ;;  %v2018_v7 = vld [vmem:[#allocation6 + $0x134] sm:$0xf]  ;;  %v2017_v11 = vld [vmem:[#allocation6 + $0x124] sm:$0xf0]  ;;  %v2000_v12 = vld [vmem:[#allocation6 + $0xa4] sm:$0xf] }
  0x5c   :  { %676 = vmatpush.bf16.msra.mxu2 %v1533_v10  ;;  %v1640_v10 = vld [vmem:[#allocation6 + $0x120] sm:$0xf]  ;;  %v2016_v15 = vld [vmem:[#allocation6 + $0x124] sm:$0xf]  ;;  %v1642_v16 = vld [vmem:[#allocation6 + $0x128] sm:$0xf0] }
  0x5d   :  { %637 = vmatpush.bf16.msra.mxu3 %v1505_v4  ;;  %v2002_v4 = vld [vmem:[#allocation6 + $0xb4] sm:$0xf]  ;;  %v1641_v13 = vor.u32 %v2017_v11, %v1640_v10  ;;  %v1645_v18 = vor.u32 %v2016_v15, %v1642_v16  ;;  %v306_v19 = vld [vmem:[%s2645_s15] sm:$0x7]  ;;  %v1632_v20 = vld [vmem:[#allocation6 + $0x110] sm:$0xf] }
  0x5e   :  { %651 = vmatpush.bf16.msra.mxu0 %v1569_v8  ;;  %662 = vmatpush.bf16.msrb.mxu1 %v1657_v56  ;;  %v1589_v6 = vor.u32 %v2002_v4, %v1586_v5  ;;  %v1650_v8 = vld [vmem:[#allocation6 + $0x138] sm:$0xf0]  ;;  %v2015_v21 = vld [vmem:[#allocation6 + $0x114] sm:$0xf0]  ;;  %v1998_v22 = vld [vmem:[#allocation6 + $0x94] sm:$0xf] }
  0x5f   :  { %v1653_v9 = vor.u32 %v2018_v7, %v1650_v8  ;;  %v1633_v23 = vor.u32 %v2015_v21, %v1632_v20  ;;  %v1634_v26 = vld [vmem:[#allocation6 + $0x118] sm:$0xf0]  ;;  %v309_v27 = vperm.slane %v306_v19, 1  ;;  %v320_v31 = vld [vmem:[%s2638_s8] sm:$0x7]  ;;  %v308_v44 = vperm.slane %v306_v19, 0 }
  0x60   :  { %677 = vmatpush.bf16.msra.mxu2 %v1525_v24  ;;  %v1570_v24 = vld [vmem:[#allocation6 + $0x98] sm:$0xf0]  ;;  %v1624_v32 = vld [vmem:[#allocation6 + $0x100] sm:$0xf]  ;;  %v2013_v33 = vld [vmem:[#allocation6 + $0x104] sm:$0xf0] }
  0x61   :  { %638 = vmatpush.bf16.msra.mxu3 %v1497_v14  ;;  %v1578_v14 = vld [vmem:[#allocation6 + $0xa8] sm:$0xf0]  ;;  %v1996_v34 = vld [vmem:[#allocation6 + $0x84] sm:$0xf]  ;;  %v1625_v35 = vor.u32 %v2013_v33, %v1624_v32  ;;  %v310_v62 = vperm.slane %v306_v19, 2  ;;  %vm1454_vm1 = vcmask 64512  }
  0x62   :  { %652 = vmatpush.bf16.msra.mxu0 %v1561_v17  ;;  %663 = vmatpush.bf16.msrb.mxu1 %v1649_v3  ;;  %v1581_v17 = vor.u32 %v2000_v12, %v1578_v14  ;;  %v1626_v38 = vld [vmem:[#allocation6 + $0x108] sm:$0xf0]  ;;  %v1744_v8 = vld [vmem:[#allocation7 + $0x70] sm:$0xf]  ;;  %v2042_v10 = vld [vmem:[#allocation7 + $0x74] sm:$0xf] }
  0x63   :  { %v1746_v12 = vld [vmem:[#allocation7 + $0x78] sm:$0xf0]  ;;  %v1736_v14 = vld [vmem:[#allocation7 + $0x60] sm:$0xf]  ;;  %v2041_v15 = vld [vmem:[#allocation7 + $0x64] sm:$0xf0] }
  0x64   :  { %678 = vmatpush.bf16.msra.mxu2 %v1517_v36  ;;  %v1562_v36 = vld [vmem:[#allocation6 + $0x88] sm:$0xf0]  ;;  %v2040_v16 = vld [vmem:[#allocation7 + $0x64] sm:$0xf]  ;;  %v1728_v19 = vld [vmem:[#allocation7 + $0x50] sm:$0xf] }
  0x65   :  { %687 = vmatpush.bf16.msrb.mxu3 %v1621_v25  ;;  %v2014_v25 = vld [vmem:[#allocation6 + $0x114] sm:$0xf]  ;;  %v1565_v41 = vor.u32 %v1996_v34, %v1562_v36  ;;  %v2039_v20 = vld [vmem:[#allocation7 + $0x54] sm:$0xf0]  ;;  %v1720_v32 = vld [vmem:[#allocation7 + $0x40] sm:$0xf] }
  0x66   :  { %701 = vmatpush.bf16.msrb.mxu0 %v1685_v28  ;;  %664 = vmatpush.bf16.msrb.mxu1 %v1641_v13  ;;  %v1573_v28 = vor.u32 %v1998_v22, %v1570_v24  ;;  %v1637_v29 = vor.u32 %v2014_v25, %v1634_v26  ;;  %v1749_v13 = vor.u32 %v2042_v10, %v1746_v12  ;;  %v1808_v22 = vld [vmem:[#allocation7 + $0xf0] sm:$0xf]  ;;  %v2038_v24 = vld [vmem:[#allocation7 + $0x54] sm:$0xf]  ;;  %v2037_v33 = vld [vmem:[#allocation7 + $0x44] sm:$0xf0] }
  0x67   :  { %v1729_v25 = vor.u32 %v2039_v20, %v1728_v19  ;;  %v1800_v34 = vld [vmem:[#allocation7 + $0xe0] sm:$0xf]  ;;  %v2057_v36 = vld [vmem:[#allocation7 + $0xe4] sm:$0xf0]  ;;  %v2050_v12 = vld [vmem:[#allocation7 + $0xb4] sm:$0xf] }
  0x68   :  { %679 = vmatpush.bf16.msra.mxu2 %v1509_v48  ;;  %v2049_v20 = vld [vmem:[#allocation7 + $0xa4] sm:$0xf0] }
  0x69   :  { %688 = vmatpush.bf16.msrb.mxu3 %v1613_v37  ;;  %v2012_v37 = vld [vmem:[#allocation6 + $0x104] sm:$0xf] }
  0x6a   :  { %702 = vmatpush.bf16.msrb.mxu0 %v1677_v40  ;;  %665 = vmatpush.bf16.msrb.mxu1 %v1633_v23  ;;  %v323_v40 = vperm.slane %v320_v31, 1  ;;  %v1629_v42 = vor.u32 %v2012_v37, %v1626_v38  ;;  %v2059_v23 = vld [vmem:[#allocation7 + $0xf4] sm:$0xf0]  ;;  %v2036_v37 = vld [vmem:[#allocation7 + $0x44] sm:$0xf] }
  0x6b   :  { %v1809_v26 = vor.u32 %v2059_v23, %v1808_v22  ;;  %v1722_v38 = vld [vmem:[#allocation7 + $0x48] sm:$0xf0] }
  0x6c   :  { %680 = vmatpush.bf16.msra.mxu2 %v1501_v60  ;;  %v1690_v22 = vld [vmem:[#allocation7 + $0x8] sm:$0xf0] }
  0x6d   :  { %689 = vmatpush.bf16.msrb.mxu3 %v1605_v49  ;;  %v322_v49 = vperm.slane %v320_v31, 0 }
  0x6e   :  { %703 = vmatpush.bf16.msrb.mxu0 %v1669_v52  ;;  %666 = vmatpush.bf16.msrb.mxu1 %v1625_v35  ;;  %v1721_v35 = vor.u32 %v2037_v33, %v1720_v32  ;;  %v1762_v32 = vld [vmem:[#allocation7 + $0x98] sm:$0xf0] }
  0x70   :  { %947 = vmatpush.bf16.msrb.mxu2 %v1809_v26  ;;  %v1770_v26 = vld [vmem:[#allocation7 + $0xa8] sm:$0xf0] }
  0x71   :  { %690 = vmatpush.bf16.msrb.mxu3 %v1597_v61 }
  0x72   :  { %704 = vmatpush.bf16.msrb.mxu0 %v1661_v0  ;;  %v324_v0 = vperm.slane %v320_v31, 2 }
  0x75   :  { %691 = vmatpush.bf16.msrb.mxu3 %v1589_v6 }
  0x76   :  { %705 = vmatpush.bf16.msrb.mxu0 %v1653_v9  ;;  %v2043_v9 = vld [vmem:[#allocation7 + $0x74] sm:$0xf0] }
  0x77   :  { %v1745_v11 = vor.u32 %v2043_v9, %v1744_v8  ;;  %v2051_v8 = vld [vmem:[#allocation7 + $0xb4] sm:$0xf0]  ;;  %v2030_v9 = vld [vmem:[#allocation7 + $0x14] sm:$0xf] }
  0x79   :  { %692 = vmatpush.bf16.msrb.mxu3 %v1581_v17  ;;  %933 = vmatpush.bf16.msra.mxu1 %v1745_v11  ;;  %v1737_v17 = vor.u32 %v2041_v15, %v1736_v14  ;;  %v1698_v11 = vld [vmem:[#allocation7 + $0x18] sm:$0xf0] }
  0x7a   :  { %706 = vmatpush.bf16.msrb.mxu0 %v1645_v18  ;;  %v1738_v18 = vld [vmem:[#allocation7 + $0x68] sm:$0xf0]  ;;  %v1701_v14 = vor.u32 %v2030_v9, %v1698_v11 }
  0x7b   :  { %v1741_v21 = vor.u32 %v2040_v16, %v1738_v18  ;;  %v1688_v16 = vld [vmem:[#allocation7] sm:$0xf] }
  0x7c   :  { %v1768_v18 = vld [vmem:[#allocation7 + $0xa0] sm:$0xf] }
  0x7d   :  { %693 = vmatpush.bf16.msrb.mxu3 %v1573_v28  ;;  %934 = vmatpush.bf16.msra.mxu1 %v1737_v17  ;;  %v2058_v28 = vld [vmem:[#allocation7 + $0xf4] sm:$0xf]  ;;  %v2029_v17 = vld [vmem:[#allocation7 + $0x4] sm:$0xf0]  ;;  %v1769_v23 = vor.u32 %v2049_v20, %v1768_v18  ;;  %v2067_v18 = vld [vmem:[#allocation9 + $0x38] sm:$0xff] }
  0x7e   :  { %707 = vmatpush.bf16.msrb.mxu0 %v1637_v29  ;;  %v1810_v29 = vld [vmem:[#allocation7 + $0xf8] sm:$0xf0]  ;;  %v1689_v19 = vor.u32 %v2029_v17, %v1688_v16  ;;  %v2074_v17 = vld [vmem:[#allocation9 + $0x70] sm:$0xff] }
  0x7f   :  { %v1813_v31 = vor.u32 %v2058_v28, %v1810_v29  ;;  %v1760_v28 = vld [vmem:[#allocation7 + $0x90] sm:$0xf]  ;;  %v2047_v29 = vld [vmem:[#allocation7 + $0x94] sm:$0xf0] }
  0x80   :  { %v2066_v20 = vld [vmem:[#allocation9 + $0x30] sm:$0xff] }
  0x81   :  { %694 = vmatpush.bf16.msrb.mxu3 %v1565_v41  ;;  %935 = vmatpush.bf16.msra.mxu1 %v1729_v25  ;;  %v2056_v41 = vld [vmem:[#allocation7 + $0xe4] sm:$0xf] }
  0x82   :  { %708 = vmatpush.bf16.msrb.mxu0 %v1629_v42  ;;  %v1802_v42 = vld [vmem:[#allocation7 + $0xe8] sm:$0xf0]  ;;  %v2048_v25 = vld [vmem:[#allocation7 + $0xa4] sm:$0xf] }
  0x85   :  { %936 = vmatpush.bf16.msra.mxu1 %v1721_v35 }
  0xc5   :  { %v287_v30 = vpop.f32.mrf.mxu1 }
  0xc6   :  { %v315_v39 = vmul.f32 %v309_v27, %v287_v30 }
  0xc8   :  { %v329_v45 = vadd.f32 %v323_v40, %v315_v39  ;;  %v1801_v39 = vor.u32 %v2057_v36, %v1800_v34  ;;  %v1752_v36 = vld [vmem:[#allocation7 + $0x80] sm:$0xf] }
  0xca   :  { %v273_v43 = vpop.f32.mrf.mxu2  ;;  %v335_v50 = vmax.f32 %v329_v45, 0.0  ;;  %948 = vmatpush.bf16.msrb.mxu2 %v1801_v39  ;;  %v2035_v45 = vld [vmem:[#allocation7 + $0x34] sm:$0xf0] }
  0xcb   :  { %v314_v48 = vmul.f32 %v308_v44, %v273_v43  ;;  %v1805_v43 = vor.u32 %v2056_v41, %v1802_v42  ;;  %v2075_v42 = vld [vmem:[#allocation9 + $0x78] sm:$0xff] }
  0xcd   :  { %v289_v46 = vpop.f32.mrf.mxu1  ;;  %v328_v54 = vadd.f32 %v322_v49, %v314_v48  ;;  %v2055_v48 = vld [vmem:[#allocation7 + $0xd4] sm:$0xf0] }
  0xce   :  { %v318_v47 = vmul.f32 %v309_v27, %v289_v46  ;;  %v1730_v27 = vld [vmem:[#allocation7 + $0x58] sm:$0xf0] }
  0xcf   :  { %v334_v58 = vmax.f32 %v328_v54, 0.0  ;;  %v1733_v30 = vor.u32 %v2038_v24, %v1730_v27  ;;  %v1794_v54 = vld [vmem:[#allocation7 + $0xd8] sm:$0xf0]  ;;  %v1773_v27 = vor.u32 %v2048_v25, %v1770_v26  ;;  %v2070_v25 = vld [vmem:[#allocation9 + $0x50] sm:$0xff] }
  0xd0   :  { %v332_v51 = vadd.f32 %v323_v40, %v318_v47  ;;  %v1725_v40 = vor.u32 %v2036_v37, %v1722_v38  ;;  %v1792_v47 = vld [vmem:[#allocation7 + $0xd0] sm:$0xf]  ;;  %v2045_v37 = vld [vmem:[#allocation7 + $0x84] sm:$0xf0]  ;;  %v2044_v38 = vld [vmem:[#allocation7 + $0x84] sm:$0xf] }
  0xd1   :  { %v1753_v39 = vor.u32 %v2045_v37, %v1752_v36  ;;  %v2063_v26 = vld [vmem:[#allocation9 + $0x18] sm:$0xff]  ;;  %v989_v37 = vld [vmem:[%s2647_s17] sm:$0x3] }
  0xd2   :  { %v338_v52 = vmax.f32 %v332_v51, 0.0  ;;  %v275_v53 = vpop.f32.mrf.mxu2  ;;  %v1714_v51 = vld [vmem:[#allocation7 + $0x38] sm:$0xf0] }
  0xd3   :  { %v317_v55 = vmul.f32 %v308_v44, %v275_v53  ;;  %v1712_v44 = vld [vmem:[#allocation7 + $0x30] sm:$0xf]  ;;  %v2054_v53 = vld [vmem:[#allocation7 + $0xd4] sm:$0xf] }
  0xd4   :  { %v341_v56 = vpack.c.bf16 %v338_v52, %v335_v50  ;;  %v1713_v46 = vor.u32 %v2035_v45, %v1712_v44  ;;  %v2034_v50 = vld [vmem:[#allocation7 + $0x34] sm:$0xf] }
  0xd5   :  { %v331_v57 = vadd.f32 %v322_v49, %v317_v55  ;;  %v1793_v49 = vor.u32 %v2055_v48, %v1792_v47  ;;  %v1717_v52 = vor.u32 %v2034_v50, %v1714_v51  ;;  %v1797_v55 = vor.u32 %v2054_v53, %v1794_v54  ;;  %v725_v51 = vld [vmem:[%s2639_s9] sm:$0x3] }
  0xd6   :  { %653 = vmatmul.bf16.vlgmr.msra.gmra.mxu0 %v341_v56  ;;  %937 = vmatpush.bf16.msra.mxu1 %v1713_v46  ;;  %v715_v46 = vld [vmem:[%s2646_s16] sm:$0x3] }
  0xd7   :  { %v337_v59 = vmax.f32 %v331_v57, 0.0  ;;  %975 = vmatpush.bf16.msra.mxu0 %v1813_v31  ;;  %949 = vmatpush.bf16.msrb.mxu2 %v1793_v49  ;;  %v2033_v57 = vld [vmem:[#allocation7 + $0x24] sm:$0xf0]  ;;  %v1761_v31 = vor.u32 %v2047_v29, %v1760_v28  ;;  %v717_v49 = vperm.slane %v715_v46, 0  ;;  %v2062_v28 = vld [vmem:[#allocation9 + $0x10] sm:$0xff]  ;;  %v2068_v29 = vld [vmem:[#allocation9 + $0x40] sm:$0xff] }
  0xd9   :  { %v340_v60 = vpack.c.bf16 %v337_v59, %v334_v58  ;;  %v1784_v58 = vld [vmem:[#allocation7 + $0xc0] sm:$0xf] }
  0xda   :  { %v301_v61 = vpop.f32.mrf.mxu2 }
  0xdb   :  { %639 = vmatmul.bf16.vlgmr.msra.gmra.mxu3 %v340_v60  ;;  %681 = vmatmul.bf16.vlgmr.msra.gmra.mxu2 %v340_v60  ;;  %v316_v63 = vmul.f32 %v310_v62, %v301_v61  ;;  %v2053_v60 = vld [vmem:[#allocation7 + $0xc4] sm:$0xf0]  ;;  %v2032_v61 = vld [vmem:[#allocation7 + $0x24] sm:$0xf] }
  0xdc   :  { %961 = vmatpush.bf16.msra.mxu3 %v1749_v13  ;;  %976 = vmatpush.bf16.msra.mxu0 %v1805_v43  ;;  %v1778_v13 = vld [vmem:[#allocation7 + $0xb8] sm:$0xf0] }
  0xdd   :  { %v330_v2 = vadd.f32 %v324_v0, %v316_v63  ;;  %v1785_v63 = vor.u32 %v2053_v60, %v1784_v58  ;;  %v1781_v15 = vor.u32 %v2050_v12, %v1778_v13 }
  0xdf   :  { %v336_v5 = vmax.f32 %v330_v2, 0.0  ;;  %v1786_v2 = vld [vmem:[#allocation7 + $0xc8] sm:$0xf0]  ;;  %950 = vmatpush.bf16.msrb.mxu2 %v1785_v63 }
  0xe0   :  { %962 = vmatpush.bf16.msra.mxu3 %v1741_v21  ;;  %977 = vmatpush.bf16.msra.mxu0 %v1797_v55  ;;  %v2028_v21 = vld [vmem:[#allocation7 + $0x4] sm:$0xf] }
  0xe1   :  { %v1693_v24 = vor.u32 %v2028_v21, %v1690_v22  ;;  %v2072_v21 = vld [vmem:[#allocation9 + $0x60] sm:$0xff]  ;;  %v2065_v22 = vld [vmem:[#allocation9 + $0x28] sm:$0xff] }
  0xe2   :  { %v303_v1 = vpop.f32.mrf.mxu2 }
  0xe3   :  { %v319_v3 = vmul.f32 %v310_v62, %v303_v1  ;;  %v1706_v62 = vld [vmem:[#allocation7 + $0x28] sm:$0xf0]  ;;  %v2052_v1 = vld [vmem:[#allocation7 + $0xc4] sm:$0xf] }
  0xe4   :  { %963 = vmatpush.bf16.msra.mxu3 %v1733_v30  ;;  %v2046_v30 = vld [vmem:[#allocation7 + $0x94] sm:$0xf] }
  0xe5   :  { %v333_v4 = vadd.f32 %v324_v0, %v319_v3  ;;  %v1709_v0 = vor.u32 %v2032_v61, %v1706_v62  ;;  %v1789_v3 = vor.u32 %v2052_v1, %v1786_v2  ;;  %v1765_v34 = vor.u32 %v2046_v30, %v1762_v32  ;;  %v2061_v30 = vld [vmem:[#allocation9 + $0x8] sm:$0xff]  ;;  %v2083_v32 = vld [vmem:[%s2671_s27 + $0x38] sm:$0xff] }
  0xe6   :  { %v718_v62 = vperm.slane %v715_v46, 1  ;;  %v728_v2 = vperm.slane %v725_v51, 1 }
  0xe7   :  { %v339_v6 = vmax.f32 %v333_v4, 0.0  ;;  %v1696_v4 = vld [vmem:[#allocation7 + $0x10] sm:$0xf]  ;;  %978 = vmatpush.bf16.msra.mxu0 %v1789_v3 }
  0xe8   :  { %964 = vmatpush.bf16.msra.mxu3 %v1725_v40  ;;  %v1754_v40 = vld [vmem:[#allocation7 + $0x88] sm:$0xf0] }
  0xe9   :  { %v342_v7 = vpack.c.bf16 %v339_v6, %v336_v5  ;;  %v2031_v5 = vld [vmem:[#allocation7 + $0x14] sm:$0xf0]  ;;  %v1776_v6 = vld [vmem:[#allocation7 + $0xb0] sm:$0xf]  ;;  %v1757_v41 = vor.u32 %v2044_v38, %v1754_v40 }
  0xea   :  { %v1777_v10 = vor.u32 %v2051_v8, %v1776_v6 }
  0xeb   :  { %667 = vmatmul.bf16.vlgmr.msrb.gmra.mxu1 %v342_v7  ;;  %695 = vmatmul.bf16.vlgmr.msrb.gmra.mxu3 %v341_v56  ;;  %v1704_v56 = vld [vmem:[#allocation7 + $0x20] sm:$0xf] }
  0xec   :  { %709 = vmatmul.bf16.vlgmr.msrb.gmra.mxu0 %v342_v7  ;;  %965 = vmatpush.bf16.msra.mxu3 %v1717_v52  ;;  %v1705_v59 = vor.u32 %v2033_v57, %v1704_v56  ;;  %v1697_v7 = vor.u32 %v2031_v5, %v1696_v4  ;;  %v727_v56 = vperm.slane %v725_v51, 0 }
  0xed   :  { %951 = vmatpush.bf16.msrb.mxu2 %v1777_v10  ;;  %979 = vmatpush.bf16.msra.mxu0 %v1781_v15 }
  0xee   :  { %938 = vmatpush.bf16.msra.mxu1 %v1705_v59 }
  0xf0   :  { %966 = vmatpush.bf16.msra.mxu3 %v1709_v0 }
  0xf1   :  { %952 = vmatpush.bf16.msrb.mxu2 %v1769_v23  ;;  %980 = vmatpush.bf16.msra.mxu0 %v1773_v27  ;;  %v2071_v23 = vld [vmem:[#allocation9 + $0x58] sm:$0xff]  ;;  %v2069_v27 = vld [vmem:[#allocation9 + $0x48] sm:$0xff] }
  0xf2   :  { %939 = vmatpush.bf16.msra.mxu1 %v1697_v7 }
  0xf4   :  { %967 = vmatpush.bf16.msra.mxu3 %v1701_v14 }
  0xf5   :  { %953 = vmatpush.bf16.msrb.mxu2 %v1761_v31  ;;  %981 = vmatpush.bf16.msra.mxu0 %v1765_v34  ;;  %v2060_v31 = vld [vmem:[#allocation9] sm:$0xff] }
  0xf6   :  { %940 = vmatpush.bf16.msra.mxu1 %v1689_v19  ;;  %v2073_v19 = vld [vmem:[#allocation9 + $0x68] sm:$0xff] }
  0xf8   :  { %968 = vmatpush.bf16.msra.mxu3 %v1693_v24  ;;  %v2064_v24 = vld [vmem:[#allocation9 + $0x20] sm:$0xff] }
  0xf9   :  { %954 = vmatpush.bf16.msrb.mxu2 %v1753_v39  ;;  %982 = vmatpush.bf16.msra.mxu0 %v1757_v41  ;;  %v992_v39 = vperm.slane %v989_v37, 1  ;;  %v999_v41 = vld [vmem:[#allocation12] sm:$0x3] }
  0xfa   :  { %1143 = vmatpush.bf16.msrb.mxu1 %v2067_v18 }
  0xfc   :  { %1250 = vmatpush.bf16.msrb.mxu3 %v2083_v32  ;;  %v2098_v32 = vld [vmem:[%s2637_s7 + $0x30] sm:$0xff] }
  0xfd   :  { %1157 = vmatpush.bf16.msra.mxu2 %v2075_v42 }
  0xfe   :  { %1144 = vmatpush.bf16.msrb.mxu1 %v2066_v20 }
 0x101   :  { %1158 = vmatpush.bf16.msra.mxu2 %v2074_v17  ;;  %v2117_v17 = vld [vmem:[#allocation13] ss:$0 sm:$0xff] }
 0x102   :  { %1145 = vmatpush.bf16.msrb.mxu1 %v2065_v22 }
 0x105   :  { %1159 = vmatpush.bf16.msra.mxu2 %v2073_v19 }
 0x106   :  { %1146 = vmatpush.bf16.msrb.mxu1 %v2064_v24 }
 0x109   :  { %1160 = vmatpush.bf16.msra.mxu2 %v2072_v21 }
 0x10a   :  { %1147 = vmatpush.bf16.msrb.mxu1 %v2063_v26 }
 0x10d   :  { %1161 = vmatpush.bf16.msra.mxu2 %v2071_v23 }
 0x10e   :  { %1148 = vmatpush.bf16.msrb.mxu1 %v2062_v28  ;;  %v2086_v28 = vld [vmem:[#allocation10 + $0x10] sm:$0xff] }
 0x111   :  { %1162 = vmatpush.bf16.msra.mxu2 %v2070_v25 }
 0x112   :  { %1149 = vmatpush.bf16.msrb.mxu1 %v2061_v30  ;;  %v2084_v30 = vld [vmem:[#allocation10] sm:$0xff] }
 0x115   :  { %1163 = vmatpush.bf16.msra.mxu2 %v2069_v27  ;;  %v2087_v27 = vld [vmem:[#allocation10 + $0x18] sm:$0xff] }
 0x116   :  { %1150 = vmatpush.bf16.msrb.mxu1 %v2060_v31  ;;  %v2099_v31 = vld [vmem:[%s2637_s7 + $0x38] sm:$0xff] }
 0x119   :  { %1164 = vmatpush.bf16.msra.mxu2 %v2068_v29  ;;  %v2085_v29 = vld [vmem:[#allocation10 + $0x8] sm:$0xff] }
 0x153   :  { %v654_v33 = vpop.f32.mrf.mxu0 }
 0x15b   :  { %v656_v43 = vpop.f32.mrf.mxu0 }
 0x15e   :  { %v640_v35 = vpop.f32.mrf.mxu3  ;;  %v682_v50 = vpop.f32.mrf.mxu2 }
 0x15f   :  { %v655_v47 = vadd.f32 %v654_v33, %v640_v35  ;;  %v2082_v33 = vld [vmem:[%s2671_s27 + $0x30] sm:$0xff]  ;;  %v2081_v35 = vld [vmem:[%s2671_s27 + $0x28] sm:$0xff] }
 0x160   :  { %1251 = vmatpush.bf16.msrb.mxu3 %v2082_v33  ;;  %v2097_v33 = vld [vmem:[%s2637_s7 + $0x28] sm:$0xff] }
 0x164   :  { %1252 = vmatpush.bf16.msrb.mxu3 %v2081_v35 }
 0x166   :  { %v642_v44 = vpop.f32.mrf.mxu3  ;;  %v684_v1 = vpop.f32.mrf.mxu2 }
 0x167   :  { %v657_v54 = vadd.f32 %v656_v43, %v642_v44  ;;  %v1002_v44 = vperm.slane %v999_v41, 1 }
 0x168   :  { %v668_v45 = vpop.f32.mrf.mxu1 }
 0x169   :  { %v669_v48 = vadd.f32 %v668_v45, %v655_v47  ;;  %v710_v52 = vpop.f32.mrf.mxu0 }
 0x16b   :  { %v721_v55 = vmul.f32 %v717_v49, %v669_v48  ;;  %v991_v48 = vperm.slane %v989_v37, 0 }
 0x16d   :  { %v731_v60 = vadd.f32 %v727_v56, %v721_v55 }
 0x16e   :  { %v696_v53 = vpop.f32.mrf.mxu3 }
 0x16f   :  { %v697_v57 = vadd.f32 %v696_v53, %v682_v50  ;;  %v735_v4 = vmax.f32 %v731_v60, 0.0  ;;  %v1001_v53 = vperm.slane %v999_v41, 0 }
 0x170   :  { %v670_v58 = vpop.f32.mrf.mxu1 }
 0x171   :  { %v671_v59 = vadd.f32 %v670_v58, %v657_v54  ;;  %v711_v61 = vadd.f32 %v710_v52, %v697_v57  ;;  %v712_v8 = vpop.f32.mrf.mxu0 }
 0x173   :  { %v723_v63 = vmul.f32 %v717_v49, %v671_v59  ;;  %v722_v5 = vmul.f32 %v718_v62, %v711_v61 }
 0x175   :  { %v733_v0 = vadd.f32 %v727_v56, %v723_v63  ;;  %v732_v11 = vadd.f32 %v728_v2, %v722_v5  ;;  %v2078_v5 = vld [vmem:[%s2671_s27 + $0x10] sm:$0xff] }
 0x176   :  { %v698_v3 = vpop.f32.mrf.mxu3 }
 0x177   :  { %v737_v6 = vmax.f32 %v733_v0, 0.0  ;;  %v699_v7 = vadd.f32 %v698_v3, %v684_v1  ;;  %v736_v14 = vmax.f32 %v732_v11, 0.0  ;;  %v2080_v3 = vld [vmem:[%s2671_s27 + $0x20] sm:$0xff] }
 0x178   :  { %1253 = vmatpush.bf16.msrb.mxu3 %v2080_v3  ;;  %v2088_v11 = vld [vmem:[#allocation10 + $0x20] sm:$0xff] }
 0x179   :  { %v739_v9 = vpack.c.bf16 %v737_v6, %v735_v4  ;;  %v713_v10 = vadd.f32 %v712_v8, %v699_v7  ;;  %v2079_v4 = vld [vmem:[%s2671_s27 + $0x18] sm:$0xff]  ;;  %v2077_v6 = vld [vmem:[%s2671_s27 + $0x8] sm:$0xff]  ;;  %v2076_v7 = vld [vmem:[%s2671_s27] sm:$0xff] }
 0x17a   :  { %v2091_v8 = vld [vmem:[#allocation10 + $0x38] sm:$0xff] }
 0x17b   :  { %v724_v12 = vmul.f32 %v718_v62, %v713_v10  ;;  %941 = vmatmul.bf16.vlgmr.msra.gmra.mxu1 %v739_v9  ;;  %969 = vmatmul.bf16.vlgmr.msra.gmra.mxu3 %v739_v9  ;;  %v2090_v9 = vld [vmem:[#allocation10 + $0x30] sm:$0xff]  ;;  %v2089_v10 = vld [vmem:[#allocation10 + $0x28] sm:$0xff] }
 0x17c   :  { %1254 = vmatpush.bf16.msrb.mxu3 %v2079_v4  ;;  %1343 = vmatpush.bf16.msrb.mxu0 %v2091_v8 }
 0x17d   :  { %v734_v13 = vadd.f32 %v728_v2, %v724_v12  ;;  %1440 = vmatpush.bf16.msra.mxu1 %v2099_v31 }
 0x17f   :  { %v738_v15 = vmax.f32 %v734_v13, 0.0 }
 0x180   :  { %1255 = vmatpush.bf16.msrb.mxu3 %v2078_v5  ;;  %1344 = vmatpush.bf16.msrb.mxu0 %v2090_v9 }
 0x181   :  { %v740_v16 = vpack.c.bf16 %v738_v15, %v736_v14  ;;  %v2116_v15 = vld [vmem:[%s2648_s18] ss:$0 sm:$0xff]  ;;  %1441 = vmatpush.bf16.msra.mxu1 %v2098_v32 }
 0x183   :  { %955 = vmatmul.bf16.vlgmr.msrb.gmra.mxu2 %v740_v16  ;;  %983 = vmatmul.bf16.vlgmr.msra.gmra.mxu0 %v740_v16 }
 0x184   :  { %1256 = vmatpush.bf16.msrb.mxu3 %v2077_v6  ;;  %1345 = vmatpush.bf16.msrb.mxu0 %v2089_v10 }
 0x185   :  { %1442 = vmatpush.bf16.msra.mxu1 %v2097_v33 }
 0x188   :  { %1257 = vmatpush.bf16.msrb.mxu3 %v2076_v7  ;;  %1346 = vmatpush.bf16.msrb.mxu0 %v2088_v11 }
 0x18c   :  { %1347 = vmatpush.bf16.msrb.mxu0 %v2087_v27 }
 0x190   :  { %1348 = vmatpush.bf16.msrb.mxu0 %v2086_v28 }
 0x194   :  { %1349 = vmatpush.bf16.msrb.mxu0 %v2085_v29 }
 0x198   :  { %1350 = vmatpush.bf16.msrb.mxu0 %v2084_v30 }
 0x1f8   :  { %v942_v40 = vpop.f32.mrf.mxu1 }
 0x1fe   :  { %v970_v34 = vpop.f32.mrf.mxu3 }
 0x200   :  { %v984_v36 = vpop.f32.mrf.mxu0  ;;  %v944_v55 = vpop.f32.mrf.mxu1 }
 0x201   :  { %v985_v38 = vadd.f32 %v984_v36, %v970_v34  ;;  %v2096_v34 = vld [vmem:[%s2637_s7 + $0x20] sm:$0xff] }
 0x202   :  { %1443 = vmatpush.bf16.msra.mxu1 %v2096_v34  ;;  %v2118_v36 = vld [vmem:[%s2649_s19] ss:$0 sm:$0xff] }
 0x203   :  { %v996_v43 = vmul.f32 %v992_v39, %v985_v38  ;;  %v2119_v38 = vld [vmem:[#allocation15] ss:$0 sm:$0xff] }
 0x205   :  { %v1006_v50 = vadd.f32 %v1002_v44, %v996_v43 }
 0x206   :  { %v956_v42 = vpop.f32.mrf.mxu2  ;;  %v972_v45 = vpop.f32.mrf.mxu3 }
 0x207   :  { %v957_v47 = vadd.f32 %v956_v42, %v942_v40  ;;  %v1010_v57 = vmax.f32 %v1006_v50, 0.0 }
 0x208   :  { %v986_v46 = vpop.f32.mrf.mxu0 }
 0x209   :  { %v987_v49 = vadd.f32 %v986_v46, %v972_v45  ;;  %v995_v52 = vmul.f32 %v991_v48, %v957_v47  ;;  %v2095_v46 = vld [vmem:[%s2637_s7 + $0x18] sm:$0xff]  ;;  %v2094_v47 = vld [vmem:[%s2637_s7 + $0x10] sm:$0xff] }
 0x20a   :  { %1444 = vmatpush.bf16.msra.mxu1 %v2095_v46 }
 0x20b   :  { %v998_v51 = vmul.f32 %v992_v39, %v987_v49  ;;  %v1005_v60 = vadd.f32 %v1001_v53, %v995_v52  ;;  %v2092_v49 = vld [vmem:[%s2637_s7] sm:$0xff] }
 0x20d   :  { %v1008_v54 = vadd.f32 %v1002_v44, %v998_v51  ;;  %v1009_v0 = vmax.f32 %v1005_v60, 0.0  ;;  %v2120_v51 = vld [vmem:[%s2650_s20] ss:$0 sm:$0xff]  ;;  %s2672_s20 = sld [smem:[#allocation30_spill]] }
 0x20e   :  { %v958_v56 = vpop.f32.mrf.mxu2  ;;  %1445 = vmatpush.bf16.msra.mxu1 %v2094_v47 }
 0x20f   :  { %v1012_v58 = vmax.f32 %v1008_v54, 0.0  ;;  %v959_v59 = vadd.f32 %v958_v56, %v944_v55 }
 0x211   :  { %v1014_v61 = vpack.c.bf16 %v1012_v58, %v1010_v57  ;;  %v997_v62 = vmul.f32 %v991_v48, %v959_v59  ;;  %v2093_v48 = vld [vmem:[%s2637_s7 + $0x8] sm:$0xff] }
 0x212   :  { %1446 = vmatpush.bf16.msra.mxu1 %v2093_v48 }
 0x213   :  { %v1007_v63 = vadd.f32 %v1001_v53, %v997_v62  ;;  %1165 = vmatmul.bf16.vlgmr.msra.gmra.mxu2 %v1014_v61  ;;  %v2121_v53 = vld [vmem:[#allocation16] ss:$0 sm:$0xff]  ;;  %v2122_v61 = vld [vmem:[%s2644_s14] ss:$0 sm:$0xff] }
 0x215   :  { %v1011_v1 = vmax.f32 %v1007_v63, 0.0 }
 0x216   :  { %1447 = vmatpush.bf16.msra.mxu1 %v2092_v49 }
 0x217   :  { %v1013_v2 = vpack.c.bf16 %v1011_v1, %v1009_v0 }
 0x219   :  { %1151 = vmatmul.bf16.vlgmr.msrb.gmra.mxu1 %v1013_v2 }
 0x296   :  { %v1152_v12 = vpop.f32.mrf.mxu1  ;;  %v1166_v13 = vpop.f32.mrf.mxu2 }
 0x297   :  { %v1167_v14 = vadd.f32 %v1166_v13, %v1152_v12 }
 0x299   :  { %v1175_v16 = vmul.f32 %v2116_v15, %v1167_v14 }
 0x29b   :  { %v1181_v21 = vadd.f32 %v2117_v17, %v1175_v16 }
 0x29d   :  { %v1183_v24 = vmax.f32 %v1181_v21, 0.0 }
 0x29e   :  { %v1154_v18 = vpop.f32.mrf.mxu1  ;;  %v1168_v19 = vpop.f32.mrf.mxu2 }
 0x29f   :  { %v1169_v20 = vadd.f32 %v1168_v19, %v1154_v18 }
 0x2a1   :  { %v1176_v22 = vmul.f32 %v2116_v15, %v1169_v20 }
 0x2a3   :  { %v1182_v23 = vadd.f32 %v2117_v17, %v1176_v22 }
 0x2a5   :  { %v1184_v25 = vmax.f32 %v1182_v23, 0.0 }
 0x2a7   :  { %v1185_v26 = vpack.c.bf16 %v1184_v25, %v1183_v24 }
 0x2a9   :  { %1258 = vmatmul.bf16.vlgmr.msrb.gmra.mxu3 %v1185_v26 }
 0x32c   :  { %v1259_v35 = vpop.f32.mrf.mxu3 }
 0x32d   :  { %v1268_v37 = vmul.f32 %v2118_v36, %v1259_v35 }
 0x32f   :  { %v1274_v40 = vadd.f32 %v2119_v38, %v1268_v37 }
 0x331   :  { %v1276_v43 = vmax.f32 %v1274_v40, 0.0 }
 0x334   :  { %v1261_v39 = vpop.f32.mrf.mxu3 }
 0x335   :  { %v1269_v41 = vmul.f32 %v2118_v36, %v1261_v39 }
 0x337   :  { %v1275_v42 = vadd.f32 %v2119_v38, %v1269_v41 }
 0x339   :  { %v1277_v44 = vmax.f32 %v1275_v42, 0.0 }
 0x33b   :  { %v1278_v45 = vpack.c.bf16 %v1277_v44, %v1276_v43 }
 0x33d   :  { %1351 = vmatmul.bf16.vlgmr.msrb.gmra.mxu0 %v1278_v45 }
 0x3ba   :  { %v1352_v50 = vpop.f32.mrf.mxu0 }
 0x3bb   :  { %v1361_v52 = vmul.f32 %v2120_v51, %v1352_v50 }
 0x3bd   :  { %v1367_v55 = vadd.f32 %v2121_v53, %v1361_v52 }
 0x3bf   :  { %v1369_v58 = vmax.f32 %v1367_v55, 0.0 }
 0x3c2   :  { %v1354_v54 = vpop.f32.mrf.mxu0 }
 0x3c3   :  { %v1362_v56 = vmul.f32 %v2120_v51, %v1354_v54 }
 0x3c5   :  { %v1368_v57 = vadd.f32 %v2121_v53, %v1362_v56 }
 0x3c7   :  { %v1370_v59 = vmax.f32 %v1368_v57, 0.0 }
 0x3c9   :  { %v1371_v60 = vpack.c.bf16 %v1370_v59, %v1369_v58 }
 0x3cb   :  { %1448 = vmatmul.bf16.vlgmr.msra.gmra.mxu1 %v1371_v60 }
 0x448   :  { %v1449_v62 = vpop.f32.mrf.mxu1 }
 0x449   :  { %v1450_v63 = vadd.f32 %v2122_v61, %v1449_v62 }
 0x44b   :  { %1455 = vst.msk [vmem:[%s2672_s20] sm:$0xff] %vm1454_vm1, %v1450_v63 }
 0x450   :  { %v1451_v0 = vpop.f32.mrf.mxu1 }
 0x451   :  { %v1452_v1 = vadd.f32 %v2122_v61, %v1451_v0 }
 0x453   :  { %1456 = vst.msk [vmem:[%s2672_s20 + $0x8] sm:$0xff] %vm1454_vm1, %v1452_v1 }
 0x454   :  { %1461 = vsyncpa [#allocation3], 1 }
 0x455   :  { %1462 = vsyncpa [#allocation5], 1 }
 0x456   :  { %1463 = vsyncpa [#allocation8], 1 }
 0x457   :  { %1464 = vsyncpa [#allocation11], 1 }
 0x458   :  { %1465 = vsyncpa [#allocation14], 1 }
 0x459   :  { %1466 = vsyncpa [#allocation17], 1 }

</bundles_post_ra>
